<compile_context>
chip_gen: v6e
topology: v6e:2x2x1
jax: 0.10.0
libtpu: 0.0.40
codegen_flags: <defaults>
</compile_context>

<pallas_src>
import jax
import jax.numpy as jnp
from jax.experimental import pallas as pl
from jax.experimental.pallas import tpu as pltpu


def _silu(x):
    # SiLU via tanh: sigmoid(x) == 0.5 * (1 + tanh(x/2))  -> single EUP op per SiLU.
    # TODO(synk): if the EUP stays the binding slot, compute one of the two sigmoids with a
    #             clamped VALU rational approximation to split the load (validate vs tolerance).
    return x * (0.5 * jnp.tanh(0.5 * x) + 0.5)


def distance_aggregator_kernel(dist_ref, mask_ref,
                               w3_ref, w1_ref, b1_ref, w2_ref, b2_ref,
                               out_ref, msum_ref):
    u = pl.program_id(2)
    nu = pl.num_programs(2)
    cd = w3_ref.dtype                      # compute dtype (bf16 on v6e/v7x, f32 on v5e/v4)
    cu, tv = dist_ref.shape[1], dist_ref.shape[2]
    hdim = w1_ref.shape[0]

    @pl.when(u == 0)
    def _init():
        msum_ref[...] = jnp.zeros_like(msum_ref)

    d = dist_ref[0].astype(cd)             # [CU, TV] source-chunk x dest-tile distances
    m = mask_ref[0].astype(cd)             # [CU, TV] 0/1 (exact in bf16)
    one = jnp.ones_like(d)
    zero = jnp.zeros_like(d)

    # MXU-side broadcast: [CU*TV, 8] @ [8, 2H] -> lanes [:H] = d*We + be, lanes [H:] = mask
    # broadcast over H.  K padded 3 -> 8 for sublane alignment (extra rows of w3 are zero).
    x8 = jnp.stack([d, m, one, zero, zero, zero, zero, zero], axis=-1).reshape(cu * tv, 8)
    y = jnp.dot(x8, w3_ref[...], preferred_element_type=jnp.float32).astype(cd)  # [CU*TV, 2H]

    # edge_input MLP (Linear(1,H) -> SiLU) plus the extra SiLU from input_edge_func.
    e = _silu(_silu(y[:, :hdim]))
    contrib = (y[:, hdim:] * e).reshape(cu, tv, hdim)          # masked messages, compute dtype

    # f32 accumulation of per-u slices; never materialises an f32 [CU, TV, H] slab.
    acc = jnp.zeros((tv, hdim), jnp.float32)
    for i in range(cu):                                        # cu is static -> fully unrolled
        acc = acc + contrib[i].astype(jnp.float32)
    msum_ref[...] += acc

    @pl.when(u == nu - 1)
    def _finalize():
        msum = msum_ref[...]                                   # [TV, H] f32
        # node_wise_output_network: Linear -> SiLU -> Linear (no last activation)
        h = _silu(jnp.dot(msum.astype(cd), w1_ref[...],
                          preferred_element_type=jnp.float32) + b1_ref[...])
        feat = jnp.dot(h.astype(cd), w2_ref[...],
                       preferred_element_type=jnp.float32) + b2_ref[...]        # [TV, H] f32
        # per-(b, v-tile) partial 'sum' readout; the 'mean' is folded into the head outside.
        # TODO(synk): ragged/padded graphs would need a per-graph node count + node mask here
        #             (current behaviour matches the dense padded reference: all N nodes real).
        out_ref[...] = jnp.sum(feat, axis=0).reshape(out_ref.shape).astype(out_ref.dtype)


def _device_kind():
    try:
        return jax.devices()[0].device_kind.lower()
    except Exception:
        return ""


def _default_compute_dtype(kind):
    # v5e / v4 and older have no bf16 VPU/EUP path -> run the elementwise stages in f32 there.
    if any(tag in kind for tag in ("v2", "v3", "v4", "v5 lite", "v5lite", "v5e")):
        return jnp.float32
    return jnp.bfloat16


def _default_vmem_limit(kind):
    # v7x has 64 MiB physical VMEM per TensorCore -> stay well under it; v4/v5e/v6e have 128 MiB.
    if any(tag in kind for tag in ("v4", "v5", "v6")):
        return 96 * 1024 * 1024
    return 48 * 1024 * 1024


def _pick_tile(n, align, max_tile):
    """Largest `align`-multiple tile <= max_tile that divides n; falls back to the full dim."""
    if n <= max_tile:
        return n
    t = (max_tile // align) * align
    while t >= align:
        if n % t == 0:
            return t
        t -= align
    return n


def distance_aggregator(dist, mask, params, *, cu=None, tv=None, compute_dtype=None):
    B, N, N2 = dist.shape
    assert N == N2, "dist must be [B, N, N]"
    H = params['w1'].shape[0]

    kind = _device_kind()
    cd = compute_dtype if compute_dtype is not None else _default_compute_dtype(kind)
    cu = cu if cu is not None else _pick_tile(N, 8, 64)        # source-node chunk (u)
    tv = tv if tv is not None else _pick_tile(N, 128, 256)     # destination-node tile (v)
    nu, nv = N // cu, N // tv

    # O(B*N^2) inputs cross HBM as bf16 (mask 0/1 exact, dist ~0.4% quantization).
    dist_c = dist.astype(jnp.bfloat16)
    mask_c = mask.astype(jnp.bfloat16)

    # Combined edge-affine + mask-broadcast matrix for the in-kernel MXU broadcast:
    # x = [d, m, 1, 0...] (K=8)  ->  x @ w3 = [ d*We + be | m broadcast over H lanes ].
    w3 = jnp.zeros((8, 2 * H), jnp.float32)
    w3 = w3.at[0, :H].set(params['we'].reshape(-1))
    w3 = w3.at[1, H:].set(1.0)
    w3 = w3.at[2, :H].set(params['be'].reshape(-1))
    w3 = w3.astype(cd)

    w1 = params['w1'].astype(cd)
    w2 = params['w2'].astype(cd)
    b1 = params['b1'].astype(jnp.float32)
    b2 = params['b2'].astype(jnp.float32)
    weights = [w3, w1, b1, w2, b2]

    def const_spec(arr):
        nd = arr.ndim
        return pl.BlockSpec(arr.shape, lambda b, v, u, _nd=nd: (0,) * _nd)

    in_specs = [
        pl.BlockSpec((1, cu, tv), lambda b, v, u: (b, u, v)),   # dist chunk
        pl.BlockSpec((1, cu, tv), lambda b, v, u: (b, u, v)),   # mask chunk
    ] + [const_spec(w) for w in weights]

    partial = pl.pallas_call(
        distance_aggregator_kernel,
        out_shape=jax.ShapeDtypeStruct((B, nv, 1, H), jnp.float32),
        grid_spec=pltpu.PrefetchScalarGridSpec(
            num_scalar_prefetch=0,
            grid=(B, nv, nu),                     # B, v-tile parallel (megacore); u arbitrary
            in_specs=in_specs,
            out_specs=pl.BlockSpec((1, 1, 1, H), lambda b, v, u: (b, v, 0, 0)),
            scratch_shapes=[pltpu.VMEM((tv, H), jnp.float32)],  # msum accumulator
        ),
        compiler_params=pltpu.CompilerParams(
            dimension_semantics=("parallel", "parallel", "arbitrary"),
            vmem_limit_bytes=_default_vmem_limit(kind),
        ),
    )(dist_c, mask_c, *weights)

    # Epilogue (plain XLA): combine v-tile partials, fold the 'mean' readout into the head
    # weights (r = [s, s/N]  =>  r @ Wo1 == s @ (Wo1[:H] + Wo1[H:]/N)), then the ReLU head.
    # TODO(synk): readout_batchnorm=True default is modelled as identity (fresh BN, eval mode).
    r_sum = jnp.sum(partial, axis=(1, 2))                       # [B, H]
    wo1_eff = params['wo1'][:H] + params['wo1'][H:] / N
    o = jnp.maximum(r_sum @ wo1_eff + params['bo1'], 0.0)
    return o @ params['wo2'] + params['bo2']


def reference_forward(dist, mask, params):
    """Pure-JAX f32 reference matching the PyTorch module semantics."""
    e = dist[..., None] * params['we'][0] + params['be'][0]          # [B, N, N, H]
    e = jax.nn.silu(jax.nn.silu(e))
    msum = jnp.sum(mask[..., None] * e, axis=1)                      # sum over u -> [B, N, H]
    h = jax.nn.silu(msum @ params['w1'] + params['b1'])
    feat = h @ params['w2'] + params['b2']
    r_sum = jnp.sum(feat, axis=1)
    r_mean = r_sum / dist.shape[1]
    readout = jnp.concatenate([r_sum, r_mean], axis=-1)
    o = jnp.maximum(readout @ params['wo1'] + params['bo1'], 0.0)
    return o @ params['wo2'] + params['bo2']


def init_params(key, hidden_dim, readout_hidden, target_dim, n_aggr):
    """Deterministic PyTorch-Linear-style init (uniform +/- 1/sqrt(fan_in))."""
    def linear(k, fan_in, fan_out):
        kw, kb = jax.random.split(k)
        bound = 1.0 / (fan_in ** 0.5)
        w = jax.random.uniform(kw, (fan_in, fan_out), jnp.float32, -bound, bound)
        b = jax.random.uniform(kb, (1, fan_out), jnp.float32, -bound, bound)
        return w, b

    keys = jax.random.split(key, 5)
    we, be = linear(keys[0], 1, hidden_dim)                          # edge_input (layers=1)
    w1, b1 = linear(keys[1], hidden_dim, hidden_dim)                 # node_wise_output layer 1
    w2, b2 = linear(keys[2], hidden_dim, hidden_dim)                 # node_wise_output layer 2
    wo1, bo1 = linear(keys[3], hidden_dim * n_aggr, readout_hidden)  # output layer 1
    wo2, bo2 = linear(keys[4], readout_hidden, target_dim)           # output layer 2
    return dict(we=we, be=be, w1=w1, b1=b1, w2=w2, b2=b2,
                wo1=wo1, bo1=bo1, wo2=wo2, bo2=bo2)


if __name__ == "__main__":
    # H lane-aligned to 128; small N (tiles auto-fall back to the full dim).
    B, N, H, T = 2, 16, 128, 8
    key = jax.random.PRNGKey(0)
    kd, km, kp = jax.random.split(key, 3)

    dist = jax.random.uniform(kd, (B, N, N), jnp.float32, 0.5, 3.0)
    mask = (jax.random.uniform(km, (B, N, N), jnp.float32) > 0.5).astype(jnp.float32)

    params = init_params(kp, hidden_dim=H, readout_hidden=H, target_dim=T, n_aggr=2)

    out = distance_aggregator(dist, mask, params)
    out = jax.block_until_ready(out)
    assert out.shape == (B, T)

    # loose tolerance: kernel runs the big elementwise/matmul stages in bf16 on v6e/v7x.
    ref = reference_forward(dist, mask, params)
    scale = float(jnp.maximum(jnp.max(jnp.abs(ref)), 1.0))
    assert float(jnp.max(jnp.abs(out - ref))) < 0.05 * scale, "mismatch vs pure-JAX reference"
    print("KERNEL_OK")
</pallas_src>

<mosaic_0001>
module attributes {stable_mosaic.version = 11 : i64} {
  func.func @distance_aggregator_kernel(%arg0: i32, %arg1: i32, %arg2: i32, %arg3: memref<1x16x16xbf16, #tpu.memory_space<vmem>>, %arg4: memref<1x16x16xbf16, #tpu.memory_space<vmem>>, %arg5: memref<8x256xbf16, #tpu.memory_space<vmem>>, %arg6: memref<128x128xbf16, #tpu.memory_space<vmem>>, %arg7: memref<1x128xf32, #tpu.memory_space<vmem>>, %arg8: memref<128x128xbf16, #tpu.memory_space<vmem>>, %arg9: memref<1x128xf32, #tpu.memory_space<vmem>>, %arg10: memref<1x1x1x128xf32, #tpu.memory_space<vmem>>, %arg11: memref<16x128xf32, #tpu.memory_space<vmem>>) attributes {dimension_semantics = [#tpu.dimension_semantics<parallel>, #tpu.dimension_semantics<parallel>, #tpu.dimension_semantics<arbitrary>], iteration_bounds = array<i64: 2, 1, 1>, scalar_prefetch = 0 : i64, scratch_operands = 1 : i64, tpu.core_type = #tpu.core_type<tc>, window_params = [{transform_indices = @transform_0, window_bounds = array<i64: 1, 16, 16>}, {transform_indices = @transform_1, window_bounds = array<i64: 1, 16, 16>}, {pipeline_mode = #tpu.pipeline_mode<synchronous>, transform_indices = @transform_2, window_bounds = array<i64: 8, 256>}, {pipeline_mode = #tpu.pipeline_mode<synchronous>, transform_indices = @transform_3, window_bounds = array<i64: 128, 128>}, {pipeline_mode = #tpu.pipeline_mode<synchronous>, transform_indices = @transform_4, window_bounds = array<i64: 1, 128>}, {pipeline_mode = #tpu.pipeline_mode<synchronous>, transform_indices = @transform_5, window_bounds = array<i64: 128, 128>}, {pipeline_mode = #tpu.pipeline_mode<synchronous>, transform_indices = @transform_6, window_bounds = array<i64: 1, 128>}, {transform_indices = @transform_7, window_bounds = array<i64: 1, 1, 1, 128>}]} {
    %c0_i32 = arith.constant 0 : i32
    %0 = arith.cmpi eq, %arg2, %c0_i32 : i32
    %1 = arith.extui %0 : i1 to i32
    %c0_i32_0 = arith.constant 0 : i32
    %2 = arith.cmpi ne, %1, %c0_i32_0 : i32
    scf.if %2 {
      %cst_23 = arith.constant 0.000000e+00 : f32
      %113 = vector.broadcast %cst_23 : f32 to vector<16x128xf32>
      %c0_24 = arith.constant 0 : index
      %c0_25 = arith.constant 0 : index
      %114 = vector.load %arg11[%c0_24, %c0_25] : memref<16x128xf32, #tpu.memory_space<vmem>>, vector<16x128xf32>
      tpu.vector_store %arg11[%c0_24, %c0_25], %113 {strides = array<i32>} : memref<16x128xf32, #tpu.memory_space<vmem>>, vector<16x128xf32>,
    } else {
    }
    %c0 = arith.constant 0 : index
    %c0_1 = arith.constant 0 : index
    %c0_2 = arith.constant 0 : index
    %3 = vector.load %arg3[%c0, %c0_1, %c0_2] : memref<1x16x16xbf16, #tpu.memory_space<vmem>>, vector<1x16x16xbf16>
    %4 = vector.shape_cast %3 : vector<1x16x16xbf16> to vector<16x16xbf16>
    %c0_3 = arith.constant 0 : index
    %c0_4 = arith.constant 0 : index
    %c0_5 = arith.constant 0 : index
    %5 = vector.load %arg4[%c0_3, %c0_4, %c0_5] : memref<1x16x16xbf16, #tpu.memory_space<vmem>>, vector<1x16x16xbf16>
    %6 = vector.shape_cast %5 : vector<1x16x16xbf16> to vector<16x16xbf16>
    %cst = arith.constant 1.000000e+00 : bf16
    %7 = vector.broadcast %cst : bf16 to vector<16x16xbf16>
    %cst_6 = arith.constant 0.000000e+00 : bf16
    %8 = vector.broadcast %cst_6 : bf16 to vector<16x16xbf16>
    %9 = vector.shape_cast %4 : vector<16x16xbf16> to vector<16x16x1xbf16>
    %10 = vector.shape_cast %6 : vector<16x16xbf16> to vector<16x16x1xbf16>
    %11 = vector.shape_cast %7 : vector<16x16xbf16> to vector<16x16x1xbf16>
    %12 = vector.shape_cast %8 : vector<16x16xbf16> to vector<16x16x1xbf16>
    %13 = vector.shape_cast %8 : vector<16x16xbf16> to vector<16x16x1xbf16>
    %14 = vector.shape_cast %8 : vector<16x16xbf16> to vector<16x16x1xbf16>
    %15 = vector.shape_cast %8 : vector<16x16xbf16> to vector<16x16x1xbf16>
    %16 = vector.shape_cast %8 : vector<16x16xbf16> to vector<16x16x1xbf16>
    %17 = tpu.concatenate %9, %10, %11, %12, %13, %14, %15, %16 in 2 : vector<16x16x1xbf16>, vector<16x16x1xbf16>, vector<16x16x1xbf16>, vector<16x16x1xbf16>, vector<16x16x1xbf16>, vector<16x16x1xbf16>, vector<16x16x1xbf16>, vector<16x16x1xbf16> -> vector<16x16x8xbf16>
    %18 = vector.shape_cast %17 : vector<16x16x8xbf16> to vector<256x8xbf16>
    %c0_7 = arith.constant 0 : index
    %c0_8 = arith.constant 0 : index
    %19 = vector.load %arg5[%c0_7, %c0_8] : memref<8x256xbf16, #tpu.memory_space<vmem>>, vector<8x256xbf16>
    %cst_9 = arith.constant dense<0.000000e+00> : vector<256x256xf32>
    %20 = tpu.matmul %18, %19, %cst_9 {dimension_numbers = #tpu.dot_dimension_numbers<[1], [0], [0], [1], [0, 0, 1, 1], [], []>} : vector<256x8xbf16>, vector<8x256xbf16>, vector<256x256xf32> -> vector<256x256xf32>
    %21 = arith.truncf %20 : vector<256x256xf32> to vector<256x256xbf16>
    %22 = vector.extract_strided_slice %21 {offsets = [0, 0], sizes = [256, 128], strides = [1, 1]} : vector<256x256xbf16> to vector<256x128xbf16>
    %cst_10 = arith.constant 5.000000e-01 : bf16
    %23 = vector.broadcast %cst_10 : bf16 to vector<256x128xbf16>
    %24 = arith.mulf %23, %22 : vector<256x128xbf16>
    %25 = math.tanh %24 : vector<256x128xbf16>
    %cst_11 = arith.constant 5.000000e-01 : bf16
    %26 = vector.broadcast %cst_11 : bf16 to vector<256x128xbf16>
    %27 = arith.mulf %26, %25 : vector<256x128xbf16>
    %cst_12 = arith.constant 5.000000e-01 : bf16
    %28 = vector.broadcast %cst_12 : bf16 to vector<256x128xbf16>
    %29 = arith.addf %27, %28 : vector<256x128xbf16>
    %30 = arith.mulf %22, %29 : vector<256x128xbf16>
    %cst_13 = arith.constant 5.000000e-01 : bf16
    %31 = vector.broadcast %cst_13 : bf16 to vector<256x128xbf16>
    %32 = arith.mulf %31, %30 : vector<256x128xbf16>
    %33 = math.tanh %32 : vector<256x128xbf16>
    %cst_14 = arith.constant 5.000000e-01 : bf16
    %34 = vector.broadcast %cst_14 : bf16 to vector<256x128xbf16>
    %35 = arith.mulf %34, %33 : vector<256x128xbf16>
    %cst_15 = arith.constant 5.000000e-01 : bf16
    %36 = vector.broadcast %cst_15 : bf16 to vector<256x128xbf16>
    %37 = arith.addf %35, %36 : vector<256x128xbf16>
    %38 = arith.mulf %30, %37 : vector<256x128xbf16>
    %39 = vector.extract_strided_slice %21 {offsets = [0, 128], sizes = [256, 128], strides = [1, 1]} : vector<256x256xbf16> to vector<256x128xbf16>
    %40 = arith.mulf %39, %38 : vector<256x128xbf16>
    %41 = vector.shape_cast %40 : vector<256x128xbf16> to vector<16x16x128xbf16>
    %cst_16 = arith.constant 0.000000e+00 : f32
    %42 = vector.broadcast %cst_16 : f32 to vector<16x128xf32>
    %43 = vector.extract_strided_slice %41 {offsets = [0, 0, 0], sizes = [1, 16, 128], strides = [1, 1, 1]} : vector<16x16x128xbf16> to vector<1x16x128xbf16>
    %44 = vector.shape_cast %43 : vector<1x16x128xbf16> to vector<16x128xbf16>
    %45 = arith.extf %44 : vector<16x128xbf16> to vector<16x128xf32>
    %46 = arith.addf %42, %45 : vector<16x128xf32>
    %47 = vector.extract_strided_slice %41 {offsets = [1, 0, 0], sizes = [1, 16, 128], strides = [1, 1, 1]} : vector<16x16x128xbf16> to vector<1x16x128xbf16>
    %48 = vector.shape_cast %47 : vector<1x16x128xbf16> to vector<16x128xbf16>
    %49 = arith.extf %48 : vector<16x128xbf16> to vector<16x128xf32>
    %50 = arith.addf %46, %49 : vector<16x128xf32>
    %51 = vector.extract_strided_slice %41 {offsets = [2, 0, 0], sizes = [1, 16, 128], strides = [1, 1, 1]} : vector<16x16x128xbf16> to vector<1x16x128xbf16>
    %52 = vector.shape_cast %51 : vector<1x16x128xbf16> to vector<16x128xbf16>
    %53 = arith.extf %52 : vector<16x128xbf16> to vector<16x128xf32>
    %54 = arith.addf %50, %53 : vector<16x128xf32>
    %55 = vector.extract_strided_slice %41 {offsets = [3, 0, 0], sizes = [1, 16, 128], strides = [1, 1, 1]} : vector<16x16x128xbf16> to vector<1x16x128xbf16>
    %56 = vector.shape_cast %55 : vector<1x16x128xbf16> to vector<16x128xbf16>
    %57 = arith.extf %56 : vector<16x128xbf16> to vector<16x128xf32>
    %58 = arith.addf %54, %57 : vector<16x128xf32>
    %59 = vector.extract_strided_slice %41 {offsets = [4, 0, 0], sizes = [1, 16, 128], strides = [1, 1, 1]} : vector<16x16x128xbf16> to vector<1x16x128xbf16>
    %60 = vector.shape_cast %59 : vector<1x16x128xbf16> to vector<16x128xbf16>
    %61 = arith.extf %60 : vector<16x128xbf16> to vector<16x128xf32>
    %62 = arith.addf %58, %61 : vector<16x128xf32>
    %63 = vector.extract_strided_slice %41 {offsets = [5, 0, 0], sizes = [1, 16, 128], strides = [1, 1, 1]} : vector<16x16x128xbf16> to vector<1x16x128xbf16>
    %64 = vector.shape_cast %63 : vector<1x16x128xbf16> to vector<16x128xbf16>
    %65 = arith.extf %64 : vector<16x128xbf16> to vector<16x128xf32>
    %66 = arith.addf %62, %65 : vector<16x128xf32>
    %67 = vector.extract_strided_slice %41 {offsets = [6, 0, 0], sizes = [1, 16, 128], strides = [1, 1, 1]} : vector<16x16x128xbf16> to vector<1x16x128xbf16>
    %68 = vector.shape_cast %67 : vector<1x16x128xbf16> to vector<16x128xbf16>
    %69 = arith.extf %68 : vector<16x128xbf16> to vector<16x128xf32>
    %70 = arith.addf %66, %69 : vector<16x128xf32>
    %71 = vector.extract_strided_slice %41 {offsets = [7, 0, 0], sizes = [1, 16, 128], strides = [1, 1, 1]} : vector<16x16x128xbf16> to vector<1x16x128xbf16>
    %72 = vector.shape_cast %71 : vector<1x16x128xbf16> to vector<16x128xbf16>
    %73 = arith.extf %72 : vector<16x128xbf16> to vector<16x128xf32>
    %74 = arith.addf %70, %73 : vector<16x128xf32>
    %75 = vector.extract_strided_slice %41 {offsets = [8, 0, 0], sizes = [1, 16, 128], strides = [1, 1, 1]} : vector<16x16x128xbf16> to vector<1x16x128xbf16>
    %76 = vector.shape_cast %75 : vector<1x16x128xbf16> to vector<16x128xbf16>
    %77 = arith.extf %76 : vector<16x128xbf16> to vector<16x128xf32>
    %78 = arith.addf %74, %77 : vector<16x128xf32>
    %79 = vector.extract_strided_slice %41 {offsets = [9, 0, 0], sizes = [1, 16, 128], strides = [1, 1, 1]} : vector<16x16x128xbf16> to vector<1x16x128xbf16>
    %80 = vector.shape_cast %79 : vector<1x16x128xbf16> to vector<16x128xbf16>
    %81 = arith.extf %80 : vector<16x128xbf16> to vector<16x128xf32>
    %82 = arith.addf %78, %81 : vector<16x128xf32>
    %83 = vector.extract_strided_slice %41 {offsets = [10, 0, 0], sizes = [1, 16, 128], strides = [1, 1, 1]} : vector<16x16x128xbf16> to vector<1x16x128xbf16>
    %84 = vector.shape_cast %83 : vector<1x16x128xbf16> to vector<16x128xbf16>
    %85 = arith.extf %84 : vector<16x128xbf16> to vector<16x128xf32>
    %86 = arith.addf %82, %85 : vector<16x128xf32>
    %87 = vector.extract_strided_slice %41 {offsets = [11, 0, 0], sizes = [1, 16, 128], strides = [1, 1, 1]} : vector<16x16x128xbf16> to vector<1x16x128xbf16>
    %88 = vector.shape_cast %87 : vector<1x16x128xbf16> to vector<16x128xbf16>
    %89 = arith.extf %88 : vector<16x128xbf16> to vector<16x128xf32>
    %90 = arith.addf %86, %89 : vector<16x128xf32>
    %91 = vector.extract_strided_slice %41 {offsets = [12, 0, 0], sizes = [1, 16, 128], strides = [1, 1, 1]} : vector<16x16x128xbf16> to vector<1x16x128xbf16>
    %92 = vector.shape_cast %91 : vector<1x16x128xbf16> to vector<16x128xbf16>
    %93 = arith.extf %92 : vector<16x128xbf16> to vector<16x128xf32>
    %94 = arith.addf %90, %93 : vector<16x128xf32>
    %95 = vector.extract_strided_slice %41 {offsets = [13, 0, 0], sizes = [1, 16, 128], strides = [1, 1, 1]} : vector<16x16x128xbf16> to vector<1x16x128xbf16>
    %96 = vector.shape_cast %95 : vector<1x16x128xbf16> to vector<16x128xbf16>
    %97 = arith.extf %96 : vector<16x128xbf16> to vector<16x128xf32>
    %98 = arith.addf %94, %97 : vector<16x128xf32>
    %99 = vector.extract_strided_slice %41 {offsets = [14, 0, 0], sizes = [1, 16, 128], strides = [1, 1, 1]} : vector<16x16x128xbf16> to vector<1x16x128xbf16>
    %100 = vector.shape_cast %99 : vector<1x16x128xbf16> to vector<16x128xbf16>
    %101 = arith.extf %100 : vector<16x128xbf16> to vector<16x128xf32>
    %102 = arith.addf %98, %101 : vector<16x128xf32>
    %103 = vector.extract_strided_slice %41 {offsets = [15, 0, 0], sizes = [1, 16, 128], strides = [1, 1, 1]} : vector<16x16x128xbf16> to vector<1x16x128xbf16>
    %104 = vector.shape_cast %103 : vector<1x16x128xbf16> to vector<16x128xbf16>
    %105 = arith.extf %104 : vector<16x128xbf16> to vector<16x128xf32>
    %106 = arith.addf %102, %105 : vector<16x128xf32>
    %c0_17 = arith.constant 0 : index
    %c0_18 = arith.constant 0 : index
    %107 = vector.load %arg11[%c0_17, %c0_18] : memref<16x128xf32, #tpu.memory_space<vmem>>, vector<16x128xf32>
    %108 = arith.addf %107, %106 : vector<16x128xf32>
    %c0_19 = arith.constant 0 : index
    %c0_20 = arith.constant 0 : index
    %109 = vector.load %arg11[%c0_19, %c0_20] : memref<16x128xf32, #tpu.memory_space<vmem>>, vector<16x128xf32>
    tpu.vector_store %arg11[%c0_19, %c0_20], %108 {strides = array<i32>} : memref<16x128xf32, #tpu.memory_space<vmem>>, vector<16x128xf32>,
    %c0_i32_21 = arith.constant 0 : i32
    %110 = arith.cmpi eq, %arg2, %c0_i32_21 : i32
    %111 = arith.extui %110 : i1 to i32
    %c0_i32_22 = arith.constant 0 : i32
    %112 = arith.cmpi ne, %111, %c0_i32_22 : i32
    scf.if %112 {
      %c0_23 = arith.constant 0 : index
      %c0_24 = arith.constant 0 : index
      %113 = vector.load %arg11[%c0_23, %c0_24] : memref<16x128xf32, #tpu.memory_space<vmem>>, vector<16x128xf32>
      %114 = arith.truncf %113 : vector<16x128xf32> to vector<16x128xbf16>
      %c0_25 = arith.constant 0 : index
      %c0_26 = arith.constant 0 : index
      %115 = vector.load %arg6[%c0_25, %c0_26] : memref<128x128xbf16, #tpu.memory_space<vmem>>, vector<128x128xbf16>
      %cst_27 = arith.constant dense<0.000000e+00> : vector<16x128xf32>
      %116 = tpu.matmul %114, %115, %cst_27 {dimension_numbers = #tpu.dot_dimension_numbers<[1], [0], [0], [1], [0, 0, 1, 1], [], []>} : vector<16x128xbf16>, vector<128x128xbf16>, vector<16x128xf32> -> vector<16x128xf32>
      %c0_28 = arith.constant 0 : index
      %c0_29 = arith.constant 0 : index
      %117 = vector.load %arg7[%c0_28, %c0_29] : memref<1x128xf32, #tpu.memory_space<vmem>>, vector<1x128xf32>
      %118 = vector.broadcast %117 : vector<1x128xf32> to vector<16x128xf32>
      %119 = arith.addf %116, %118 : vector<16x128xf32>
      %cst_30 = arith.constant 5.000000e-01 : f32
      %120 = vector.broadcast %cst_30 : f32 to vector<16x128xf32>
      %121 = arith.mulf %120, %119 : vector<16x128xf32>
      %122 = math.tanh %121 : vector<16x128xf32>
      %cst_31 = arith.constant 5.000000e-01 : f32
      %123 = vector.broadcast %cst_31 : f32 to vector<16x128xf32>
      %124 = arith.mulf %123, %122 : vector<16x128xf32>
      %cst_32 = arith.constant 5.000000e-01 : f32
      %125 = vector.broadcast %cst_32 : f32 to vector<16x128xf32>
      %126 = arith.addf %124, %125 : vector<16x128xf32>
      %127 = arith.mulf %119, %126 : vector<16x128xf32>
      %128 = arith.truncf %127 : vector<16x128xf32> to vector<16x128xbf16>
      %c0_33 = arith.constant 0 : index
      %c0_34 = arith.constant 0 : index
      %129 = vector.load %arg8[%c0_33, %c0_34] : memref<128x128xbf16, #tpu.memory_space<vmem>>, vector<128x128xbf16>
      %cst_35 = arith.constant dense<0.000000e+00> : vector<16x128xf32>
      %130 = tpu.matmul %128, %129, %cst_35 {dimension_numbers = #tpu.dot_dimension_numbers<[1], [0], [0], [1], [0, 0, 1, 1], [], []>} : vector<16x128xbf16>, vector<128x128xbf16>, vector<16x128xf32> -> vector<16x128xf32>
      %c0_36 = arith.constant 0 : index
      %c0_37 = arith.constant 0 : index
      %131 = vector.load %arg9[%c0_36, %c0_37] : memref<1x128xf32, #tpu.memory_space<vmem>>, vector<1x128xf32>
      %132 = vector.broadcast %131 : vector<1x128xf32> to vector<16x128xf32>
      %133 = arith.addf %130, %132 : vector<16x128xf32>
      %cst_38 = arith.constant dense<0.000000e+00> : vector<128xf32>
      %134 = vector.multi_reduction <add>, %133, %cst_38 [0] : vector<16x128xf32> to vector<128xf32>
      %135 = vector.shape_cast %134 : vector<128xf32> to vector<1x1x1x128xf32>
      %c0_39 = arith.constant 0 : index
      %c0_40 = arith.constant 0 : index
      %c0_41 = arith.constant 0 : index
      %c0_42 = arith.constant 0 : index
      %136 = vector.load %arg10[%c0_39, %c0_40, %c0_41, %c0_42] : memref<1x1x1x128xf32, #tpu.memory_space<vmem>>, vector<1x1x1x128xf32>
      tpu.vector_store %arg10[%c0_39, %c0_40, %c0_41, %c0_42], %135 {strides = array<i32>} : memref<1x1x1x128xf32, #tpu.memory_space<vmem>>, vector<1x1x1x128xf32>,
    } else {
    }
    return
  }
  func.func @transform_0(%arg0: i32, %arg1: i32, %arg2: i32) -> (i32, i32, i32) {
    %c0_i32 = arith.constant 0 : i32
    return %arg0, %arg2, %arg1 : i32, i32, i32
  }
  func.func @transform_1(%arg0: i32, %arg1: i32, %arg2: i32) -> (i32, i32, i32) {
    %c0_i32 = arith.constant 0 : i32
    return %arg0, %arg2, %arg1 : i32, i32, i32
  }
  func.func @transform_2(%arg0: i32, %arg1: i32, %arg2: i32) -> (i32, i32) {
    %c0_i32 = arith.constant 0 : i32
    %c0_i32_0 = arith.constant 0 : i32
    %c0_i32_1 = arith.constant 0 : i32
    return %c0_i32, %c0_i32_0 : i32, i32
  }
  func.func @transform_3(%arg0: i32, %arg1: i32, %arg2: i32) -> (i32, i32) {
    %c0_i32 = arith.constant 0 : i32
    %c0_i32_0 = arith.constant 0 : i32
    %c0_i32_1 = arith.constant 0 : i32
    return %c0_i32, %c0_i32_0 : i32, i32
  }
  func.func @transform_4(%arg0: i32, %arg1: i32, %arg2: i32) -> (i32, i32) {
    %c0_i32 = arith.constant 0 : i32
    %c0_i32_0 = arith.constant 0 : i32
    %c0_i32_1 = arith.constant 0 : i32
    return %c0_i32, %c0_i32_0 : i32, i32
  }
  func.func @transform_5(%arg0: i32, %arg1: i32, %arg2: i32) -> (i32, i32) {
    %c0_i32 = arith.constant 0 : i32
    %c0_i32_0 = arith.constant 0 : i32
    %c0_i32_1 = arith.constant 0 : i32
    return %c0_i32, %c0_i32_0 : i32, i32
  }
  func.func @transform_6(%arg0: i32, %arg1: i32, %arg2: i32) -> (i32, i32) {
    %c0_i32 = arith.constant 0 : i32
    %c0_i32_0 = arith.constant 0 : i32
    %c0_i32_1 = arith.constant 0 : i32
    return %c0_i32, %c0_i32_0 : i32, i32
  }
  func.func @transform_7(%arg0: i32, %arg1: i32, %arg2: i32) -> (i32, i32, i32, i32) {
    %c0_i32 = arith.constant 0 : i32
    %c0_i32_0 = arith.constant 0 : i32
    %c0_i32_1 = arith.constant 0 : i32
    return %arg0, %arg1, %c0_i32, %c0_i32_0 : i32, i32, i32, i32
  }
}

</mosaic_0001>

<bundles_post_ra>
// kernel: tpu_custom_call.1
= control target key start
LH: loop header
LB: loop body
LE: loop exit
PB: predicated region body
PF: predicated region fallthrough
CT: control target
= control target key end

     0   :  { %s2999_s0 = inlined_call_operand.hbm [shape: bf16[2,16,16], index: 0, kind: input, shape index: {}]   ;;  %s3000_s1 = inlined_call_operand.hbm [shape: bf16[2,16,16], index: 1, kind: input, shape index: {}]   ;;  %s3001_s2 = inlined_call_operand.hbm [shape: bf16[8,256], index: 2, kind: input, shape index: {}]   ;;  %s3002_s3 = inlined_call_operand.hbm [shape: bf16[128,128], index: 3, kind: input, shape index: {}]   ;;  %s3003_s4 = inlined_call_operand.vmem [shape: f32[1,128], index: 4, kind: input, shape index: {}]   ;;  %s3004_s5 = inlined_call_operand.hbm [shape: bf16[128,128], index: 5, kind: input, shape index: {}]   ;;  %s3005_s6 = inlined_call_operand.vmem [shape: f32[1,128], index: 6, kind: input, shape index: {}]   ;;  %s3006_s7 = inlined_call_operand.hbm [shape: f32[2,1,1,128], index: 7, kind: output, shape index: {}]  }
   0x1   :  { %3016 = sst [smem:[#allocation20_spill]] %s2999_s0 }
   0x2   :  { %3017 = sst [smem:[#allocation21_spill]] %s3001_s2 }
   0x3   :  { %3018 = sst [smem:[#allocation22_spill]] %s3002_s3 }
   0x4   :  { %3019 = sst [smem:[#allocation23_spill]] %s3004_s5 }
   0x5   :  { %12 = vsyncpa [#allocation4], 0 }
   0x6   :  { %14 = vsyncpa [#allocation4 + $0x1], 0 }
   0x7   :  { %15 = vsyncpa [#allocation7], 0 }
   0x8   :  { %17 = vsyncpa [#allocation7 + $0x1], 0 }
   0x9   :  { %18 = vsyncpa [#allocation10], 0 }
   0xa   :  { %19 = vsyncpa [#allocation5], 0 }
   0xb   :  { %21 = vsyncpa [#allocation5 + $0x1], 0  ;;  %s2336_s24 = smov 0   ;;  %s2338_s25 = smov 0  }
   0xc   :  { %s2340_s26 = smov 0   ;;  %s2342_s27 = smov 0  }
   0xd   :  { %s2344_s28 = smov 0   ;;  %s2346_s29 = smov 0  }
   0xe LB: > { %3020 = sst [smem:[#allocation18_spill]] %s2279_s28  ;;  %s2367_s30 = sadd.s32 4294967295, %s2283_s29   ;;  %s2283_s29 = sphi %s2346_s29, %s27_s29   ;;  %s2279_s28 = sphi %s2344_s28, %s3044_s28   ;;  %s2275_s27 = sphi %s2342_s27, %s3043_s27   ;;  %s2271_s26 = sphi %s2340_s26, %s3047_s26   ;;  %s2267_s25 = sphi %s2338_s25, %s3046_s25   ;;  %s2263_s24 = sphi %s2336_s24, %s3045_s24  }
   0xf   : > { %s1744_s8 = sadd.s32 4294967294, %s2283_s29   ;;  %p70_p0 = scmp.ne.s32.totalorder %s2267_s25, %s2263_s24 }
  0x10   : > { %p3007_p1 = scmp.eq.s32.totalorder %s2367_s30, 0  ;;  %p237_p3 = scmp.eq.s32.totalorder %s1744_s8, 1 }
  0x11   : > { %p1745_p5 = scmp.ge.s32.totalorder %s2283_s29, 1  ;;  %p244_p7 = scmp.lt.s32.totalorder %s2283_s29, 3 }
  0x12   : > { %p2376_p4 = por %p3007_p1, %p70_p0  ;;  %p2381_p6 = por %p237_p3, %p70_p0 }
  0x13   : > { %p2386_p8 = pnand %p1745_p5, %p244_p7  ;;  %s2285_s12 = smov [#allocation8]  }
  0x14   : > { %s3021_s9 = scalar_select %p2376_p4, 1, 0 }
  0x15   : > { %s3022_s10 = scalar_select %p2381_p6, 1, 0 }
  0x16   : > { %s3023_s11 = scalar_select %p2386_p8, 1, 0 }
  0x17   : > { %s257_s13 = sshll.u32 %s2285_s12, 4  ;;  %p1884_p10 = pneg %p2386_p8  ;;  %s258_s13 = int_to_ptr.vmem [resolvable:$true] %s257_s13 }
  0x18   : > { %s2286_s14 = smov [#allocation9]   ;;  %s2287_s17 = smov [#allocation11]  }
  0x19   : > { %s267_s15 = sshll.u32 %s2286_s14, 4  ;;  %p2395_p11 = pnand %p1884_p10, %p3007_p1  ;;  %s268_s15 = int_to_ptr.vmem [resolvable:$true] %s267_s15 }
  0x1a   : > { %s283_s18 = sshll.u32 %s2287_s17, 4  ;;  %s2068_s19 = scalar_lea.vmem %s258_s13, 128  ;;  %s284_s18 = int_to_ptr.vmem [resolvable:$true] %s283_s18 }
  0x1b   : > { %p2059_p12 = pneg %p2395_p11  ;;  %p2069_p13 = scmp.ne.s32.totalorder %s258_s13, %s2068_s19 }
  0x1c   : > { %p2076_p5 = scmp.lt.s32.totalorder %s258_s13, %s258_s13  ;;  %p2077_p7 = scmp.lt.s32.totalorder %s2068_s19, %s2068_s19 }
  0x1d   : > { %p2071_p0 = pnand %p2069_p13, %p2059_p12 }
  0x1e   : > { %p2078_p9 = por %p2077_p7, %p2076_p5 }
  0x1f   : > { %p2072_p3 = pneg %p2071_p0 }
  0x21   : > { %p2079_p10 = pnand %p2078_p9, %p2072_p3 }
  0x23   : > { %2082 = shalt.err (!%p2079_p10)
}
  0x24   : > { %s3025_s2 = sld [smem:[#allocation21_spill]]  ;;  %s2094_s22 = scalar_lea.vmem %s268_s15, 1024 }
  0x25   : > { %p2095_p1 = scmp.ne.s32.totalorder %s268_s15, %s2094_s22  ;;  %p2102_p13 = scmp.lt.s32.totalorder %s268_s15, %s268_s15 }
  0x26   : > { %p2103_p0 = scmp.lt.s32.totalorder %s2094_s22, %s2094_s22 }
  0x27   : > { %p2097_p2 = pnand %p2095_p1, %p2059_p12 }
  0x28   : > { %p2104_p4 = por %p2103_p0, %p2102_p13 }
  0x29   : > { %p2098_p6 = pneg %p2097_p2 }
  0x2a   : > { %1887 = dma.hbm_to_vmem [thread:$0]  (!%p2395_p11), %s3025_s2, 128, %s258_s13, [#allocation7]  }
  0x2b   : > { %p2105_p8 = pnand %p2104_p4, %p2098_p6 }
  0x2d   : > { %2108 = shalt.err (!%p2105_p8)
}
  0x2e   : > { %s3010_s23 = smov 64   ;;  %s3012_s8 = smov 4  }
  0x2f   : > { %s3026_s3 = sld [smem:[#allocation22_spill]]  ;;  %s2120_s14 = scalar_lea.vmem %s284_s18, 1024 }
  0x30   : > { %p2121_p1 = scmp.ne.s32.totalorder %s284_s18, %s2120_s14  ;;  %p2128_p6 = scmp.lt.s32.totalorder %s284_s18, %s284_s18 }
  0x31   : > { %p2129_p8 = scmp.lt.s32.totalorder %s2120_s14, %s2120_s14 }
  0x32   : > { %p2123_p2 = pnand %p2121_p1, %p2059_p12 }
  0x33   : > { %p2130_p9 = por %p2129_p8, %p2128_p6 }
  0x34   : > { %p2124_p4 = pneg %p2123_p2 }
  0x35   : > { %1890 = dma.hbm_to_vmem [thread:$0]  (!%p2395_p11), %s3026_s3, 1024, %s268_s15, [#allocation10], %s3010_s23, %s3010_s23, %s3012_s8  }
  0x36   : > { %p2131_p3 = pnand %p2130_p9, %p2124_p4 }
  0x38   : > { %2134 = shalt.err (!%p2131_p3)
}
  0x39   : > { %s3027_s5 = sld [smem:[#allocation23_spill]]  ;;  %s57_s15 = sadd.s32 1, %s2271_s26 }
  0x3a   : > { %s46_s16 = sadd.s32 1, %s2279_s28  ;;  %p64_p12 = scmp.ne.s32.totalorder %s2271_s26, %s2267_s25 }
  0x3b   : > { %p48_p5 = scmp.ge.s32.totalorder %s46_s16, 2  ;;  %p65_p7 = scmp.eq.s32.totalorder %s2283_s29, 0 }
  0x3c   : > { %p3028_p10 = scmp.eq.s32.totalorder %s2367_s30, 1  ;;  %p1908_p0 = scmp.lt.s32.totalorder %s2283_s29, 2 }
  0x3d   : > { %s3049_s16 = smov (%p48_p5, %s46_s16), 0  ;;  %p66_p1 = por %p65_p7, %p64_p12 }
  0x3e   : > { %p2438_p13 = por %p3028_p10, %p64_p12  ;;  %3030 = sst [smem:[#allocation19_spill]] %s3049_s16 }
  0x3f   : > { %1893 = dma.hbm_to_vmem [thread:$0]  (!%p2395_p11), %s3027_s5, 1024, %s284_s18, [#allocation10], %s3010_s23, %s3010_s23, %s3012_s8  }
  0x40   : > { %s300_s21 = sand.u32 1, %s2271_s26   ;;  %s50_s22 = ssub.s32 %s2279_s28, %s3049_s16 }
  0x41   : > { %p55_p2 = scmp.eq.s32.totalorder %s50_s22, 0  ;;  %s1750_s18 = sshll.u32 %s300_s21, 3 }
  0x42   : > { %s1804_s12 = sshll.u32 %s2279_s28, 7  ;;  %s3031_s0 = sld [smem:[#allocation20_spill]] }
  0x43   : > { %s2450_s13 = scalar_select %p55_p2, %s2271_s26, %s57_s15  }
  0x44   : > { %s304_s23 = scalar_lea.vmem [#allocation3], %s1750_s18  ;;  %p2457_p11 = pnand %p1908_p0, %p66_p1 }
  0x45   : > { %s314_s8 = sshll.u32 %s304_s23, 4  ;;  %s2464_s22 = scalar_lea.hbm %s3000_s1, %s1804_s12  ;;  %s315_s8 = int_to_ptr.vmem [resolvable:$true] %s314_s8 }
  0x46   : > { %s328_s15 = scalar_lea.vmem [#allocation6], %s1750_s18  ;;  %s301_s28 = scalar_lea.sflag [#allocation4], %s300_s21 }
  0x47   : > { %s338_s16 = sshll.u32 %s328_s15, 4  ;;  %p2137_p4 = pneg %p2457_p11  ;;  %s339_s16 = int_to_ptr.vmem [resolvable:$true] %s338_s16 }
  0x48   : > { %s313_s19 = scalar_lea.hbm %s3031_s0, %s1804_s12  ;;  %s2148_s14 = scalar_lea.vmem %s315_s8, 128 }
  0x49   : > { %p2149_p6 = scmp.ne.s32.totalorder %s315_s8, %s2148_s14  ;;  %s2290_s23 = smov [#allocation3]  }
  0x4a   : > { %s2153_s17 = sshll.u32 %s2290_s23, 4  ;;  %s2154_s17 = int_to_ptr.vmem [resolvable:$false] %s2153_s17 }
  0x4b   : > { %p2151_p8 = pnand %p2149_p6, %p2137_p4  ;;  %s2155_s0 = scalar_lea.vmem %s2154_s17, 256 }
  0x4c   : > { %p2156_p3 = scmp.lt.s32.totalorder %s315_s8, %s2154_s17  ;;  %p2157_p12 = scmp.lt.s32.totalorder %s2155_s0, %s2148_s14 }
  0x4d   : > { %p2152_p9 = pneg %p2151_p8 }
  0x4e   : > { %p2158_p5 = por %p2157_p12, %p2156_p3 }
  0x50   : > { %p2159_p7 = pnand %p2158_p5, %p2152_p9 }
  0x52   : > { %2162 = shalt.err (!%p2159_p7)
}
  0x53   : > { %s3033_s3 = smov 4   ;;  %s3034_s5 = smov 64  }
  0x54   : > { %1897 = dma.hbm_to_vmem [thread:$0]  (!%p2457_p11), %s313_s19, 128, %s315_s8, %s301_s28, %s3034_s5, %s3034_s5, %s3033_s3  }
  0x55   : > { %s324_s21 = sand.u32 1, %s2283_s29   ;;  %s2176_s12 = scalar_lea.vmem %s339_s16, 128 }
  0x56   : > { %s325_s18 = scalar_lea.sflag [#allocation7], %s324_s21  ;;  %p2177_p10 = scmp.ne.s32.totalorder %s339_s16, %s2176_s12 }
  0x57   : > { %s2291_s0 = smov [#allocation6]  }
  0x58   : > { %p2179_p0 = pnand %p2177_p10, %p2137_p4  ;;  %s2181_s15 = sshll.u32 %s2291_s0, 4  ;;  %s2182_s15 = int_to_ptr.vmem [resolvable:$false] %s2181_s15 }
  0x59   : > { %s2183_s14 = scalar_lea.vmem %s2182_s15, 256  ;;  %p2184_p2 = scmp.lt.s32.totalorder %s339_s16, %s2182_s15 }
  0x5a   : > { %p2180_p1 = pneg %p2179_p0  ;;  %p2185_p6 = scmp.lt.s32.totalorder %s2183_s14, %s2176_s12 }
  0x5c   : > { %p2186_p8 = por %p2185_p6, %p2184_p2 }
  0x5e   : > { %p2187_p9 = pnand %p2186_p8, %p2180_p1 }
  0x60   : > { %2190 = shalt.err (!%p2187_p9)
}
  0x61   : > { %1900 = dma.hbm_to_vmem [thread:$0]  (!%p2457_p11), %s2464_s22, 128, %s339_s16, %s325_s18, %s3034_s5, %s3034_s5, %s3033_s3  }
  0x62   : > { %p3035_p3 = scmp.ne.s32.totalorder %s3023_s11, 0 }
  0x63   : > { %s2489_s28 = sand.u32 (!%p3035_p3), 1, %s2267_s25   ;;  %p3036_p4 = scmp.ne.s32.totalorder (!%p3035_p3), %s3021_s9, 0 }
  0x64   : > { %350 = sbr.rel (%p3035_p3) target bundleno = 1041 (0x411), region = 48  ;;  %s1757_s8 = sshll.u32 (!%p3035_p3), %s2489_s28, 3 }
  0x65   : > { %s353_s19 = scalar_lea.sflag (!%p3035_p3), [#allocation4], %s2489_s28  ;;  %s356_s23 = scalar_lea.vmem (!%p3035_p3), [#allocation3], %s1757_s8 }
  0x69   : > { %2242 = dma.done.wait (%p3036_p4), %s353_s19, 128  }
  0x6a   : > { %2244 = vsyncadd (%p3036_p4), %s353_s19, 4294967168  ;;  %s361_s2 = sand.u32 1, %s2367_s30   ;;  %s365_s11 = scalar_lea.vmem [#allocation6], %s1757_s8 }
  0x6b   : > { %s362_s16 = scalar_lea.sflag [#allocation7], %s361_s2 }
  0x6c   : > { %2246 = dma.done.wait (%p3036_p4), %s362_s16, 128  }
  0x6d   : > { %2248 = vsyncadd (%p3036_p4), %s362_s16, 4294967168  ;;  %p3037_p11 = scmp.eq.s32.totalorder %s2367_s30, 0 }
  0x6f   : > { %2250 = dma.done.wait (%p3037_p11), [#allocation7], 128   ;;  %p3038_p12 = pmov %p3037_p11 }
  0x70   : > { %p3039_p5 = pmov %p3037_p11 }
  0x71   : > { %2252 = vsyncadd (%p3038_p12), [#allocation7], 4294967168 }
  0x72   : > { %2254 = dma.done.wait (%p3039_p5), [#allocation10], 2048   ;;  %p3040_p7 = pmov %p3039_p5 }
  0x73   : > { %v435_v0 = vlaneseq  ;;  %v1969_v2 = vld [vmem:[%s356_s23] sm:$0xff]   ;;  %v1970_v4 = vld [vmem:[%s365_s11] sm:$0xff]   ;;  %vm865_vm0 = vcmask 1043456   ;;  %v2292_v11 = vmov 0   ;;  %vm673_vm1 = vcmask 7168   ;;  %s1801_s3 = sshll.u32 %s2275_s27, 4 }
  0x74   : > { %2256 = vsyncadd (%p3040_p7), [#allocation10], 4294965248  ;;  %v2513_v5 = vpack.i.b16 %v1969_v2, %v1969_v2  ;;  %v442_v6 = vshrl.u32 %v1969_v2, 16  ;;  %v826_v7 = vld [vmem:[#allocation8] sm:$0xff]  ;;  %v2515_v8 = vpack.i.b16 %v1970_v4, %v1970_v4  ;;  %v565_v9 = vshrl.u32 %v1970_v4, 16  ;;  %904 = vmatprep.mubr.bf16.mxu0 %v2292_v11  ;;  %1014 = vmatprep.mubr.bf16.mxu1 %v2292_v11  ;;  %s411_s5 = scalar_lea.vmem [#allocation12], %s2489_s28  ;;  %s1604_s0 = scalar_lea.hbm %s3006_s7, %s1801_s3 }
  0x75   : > { %v2510_v1 = vshrl.u32 %v435_v0, 7  ;;  %v1765_v10 = vcombine.high %v826_v7, %v826_v7  ;;  %v1764_v19 = vcombine.low %v826_v7, %v826_v7  ;;  %vm722_vm2 = vcmask 15360   ;;  %s1606_s21 = sshll.u32 %s411_s5, 4  ;;  %s1593_s15 = scalar_lea.sflag [#allocation5], %s2489_s28  ;;  %s1607_s21 = int_to_ptr.vmem [resolvable:$true] %s1606_s21 }
  0x76   : > { %v2520_v13 = vpack.i.b16 %v442_v6, %v442_v6  ;;  %v2522_v14 = vpack.i.b16 %v565_v9, %v565_v9  ;;  %vm740_vm3 = vcmask 23552   ;;  %vm758_vm4 = vcmask 31744   ;;  %s2191_s14 = scalar_lea.vmem %s1607_s21, 16  ;;  %s2295_s8 = smov [#allocation12]  }
  0x77   : > { %v437_v3 = vsub.s32 0, %v2510_v1  ;;  %1766 = vmatprep.subr.msk.bf16.mxu0 %vm865_vm0, %v1765_v10  ;;  %v454_v17 = vsub.s32 1, %v2510_v1  ;;  %1864 = vmatprep.subr.msk.bf16.mxu1 %vm865_vm0, %v1765_v10  ;;  %v867_v22 = vsel %vm865_vm0, %v1764_v19, 0  ;;  %v468_v24 = vsub.s32 2, %v2510_v1  ;;  %p2192_p10 = scmp.ne.s32.totalorder %s1607_s21, %s2191_s14  ;;  %s2195_s19 = sshll.u32 %s2295_s8, 4  ;;  %s2196_s19 = int_to_ptr.vmem [resolvable:$false] %s2195_s19 }
  0x78   : > { %887 = vmatpush1.bf16.msra.mxu0 %v867_v22  ;;  %1865 = vmatpush1.bf16.msra.mxu1 %v867_v22  ;;  %v482_v29 = vsub.s32 3, %v2510_v1  ;;  %v510_v34 = vsub.s32 5, %v2510_v1  ;;  %v496_v37 = vsub.s32 4, %v2510_v1  ;;  %v524_v40 = vsub.s32 6, %v2510_v1  ;;  %s2197_s27 = scalar_lea.vmem %s2196_s19, 32  ;;  %p2198_p2 = scmp.lt.s32.totalorder %s1607_s21, %s2196_s19 }
  0x79   : > { %v438_v12 = vrot.slane %v2513_v5, %v437_v3  ;;  %v448_v15 = vrot.slane %v2520_v13, %v437_v3  ;;  %v561_v16 = vrot.slane %v2515_v8, %v437_v3  ;;  %v571_v18 = vrot.slane %v2522_v14, %v437_v3  ;;  %p2193_p0 = pnand %p2192_p10, %p2438_p13  ;;  %p2199_p6 = scmp.lt.s32.totalorder %s2197_s27, %s2191_s14 }
  0x7a   : > { %v455_v20 = vrot.slane %v2513_v5, %v454_v17  ;;  %v578_v21 = vrot.slane %v2515_v8, %v454_v17  ;;  %v462_v23 = vrot.slane %v2520_v13, %v454_v17  ;;  %v585_v25 = vrot.slane %v2522_v14, %v454_v17 }
  0x7b   : > { %440 = vbcast.lane.c.b16.xlu0 %v438_v12, 256  ;;  %450 = vbcast.lane.c.b16.xlu1 %v448_v15, 256  ;;  %v469_v26 = vrot.slane %v2513_v5, %v468_v24  ;;  %v592_v27 = vrot.slane %v2515_v8, %v468_v24  ;;  %v476_v28 = vrot.slane %v2520_v13, %v468_v24  ;;  %v538_v49 = vsub.s32 7, %v2510_v1  ;;  %p2194_p1 = pneg %p2193_p0  ;;  %p2200_p8 = por %p2199_p6, %p2198_p2 }
  0x7c   : > { %v599_v30 = vrot.slane %v2522_v14, %v468_v24  ;;  %v483_v31 = vrot.slane %v2513_v5, %v482_v29  ;;  %v606_v32 = vrot.slane %v2515_v8, %v482_v29  ;;  %v490_v33 = vrot.slane %v2520_v13, %v482_v29 }
  0x7d   : > { %v613_v35 = vrot.slane %v2522_v14, %v482_v29  ;;  %v518_v36 = vrot.slane %v2520_v13, %v510_v34  ;;  %v641_v38 = vrot.slane %v2522_v14, %v510_v34  ;;  %v497_v39 = vrot.slane %v2513_v5, %v496_v37  ;;  %p2201_p9 = pnand %p2200_p8, %p2194_p1 }
  0x7e   : > { %v620_v41 = vrot.slane %v2515_v8, %v496_v37  ;;  %v525_v42 = vrot.slane %v2513_v5, %v524_v40  ;;  %v648_v43 = vrot.slane %v2515_v8, %v524_v40  ;;  %v504_v44 = vrot.slane %v2520_v13, %v496_v37 }
  0x7f   : > { %563 = vbcast.lane.c.b16.xlu0 %v561_v16, 256  ;;  %573 = vbcast.lane.c.b16.xlu1 %v571_v18, 256  ;;  %v627_v45 = vrot.slane %v2522_v14, %v496_v37  ;;  %v532_v46 = vrot.slane %v2520_v13, %v524_v40  ;;  %v655_v47 = vrot.slane %v2522_v14, %v524_v40  ;;  %vm775_vm5 = vcmask 39936  }
  0x80   : > { %v511_v48 = vrot.slane %v2513_v5, %v510_v34  ;;  %v634_v50 = vrot.slane %v2515_v8, %v510_v34  ;;  %v539_v51 = vrot.slane %v2513_v5, %v538_v49  ;;  %v662_v52 = vrot.slane %v2515_v8, %v538_v49 }
  0x81   : > { %v546_v53 = vrot.slane %v2520_v13, %v538_v49  ;;  %v669_v54 = vrot.slane %v2522_v14, %v538_v49  ;;  %vm792_vm6 = vcmask 48128   ;;  %vm809_vm7 = vcmask 56320  }
  0x82   : > { %vm832_vm8 = vcmask 64512   ;;  %vm2294_vm9 = vmmov 0  }
  0x83   : > { %457 = vbcast.lane.c.b16.xlu0 %v455_v20, 256  ;;  %580 = vbcast.lane.c.b16.xlu1 %v578_v21, 256 }
  0x87   : > { %464 = vbcast.lane.c.b16.xlu0 %v462_v23, 256  ;;  %587 = vbcast.lane.c.b16.xlu1 %v585_v25, 256 }
  0x8b   : > { %471 = vbcast.lane.c.b16.xlu0 %v469_v26, 256  ;;  %594 = vbcast.lane.c.b16.xlu1 %v592_v27, 256 }
  0x8f   : > { %478 = vbcast.lane.c.b16.xlu0 %v476_v28, 256  ;;  %601 = vbcast.lane.c.b16.xlu1 %v599_v30, 256 }
  0x93   : > { %485 = vbcast.lane.c.b16.xlu0 %v483_v31, 256  ;;  %608 = vbcast.lane.c.b16.xlu1 %v606_v32, 256 }
  0x97   : > { %492 = vbcast.lane.c.b16.xlu0 %v490_v33, 256  ;;  %615 = vbcast.lane.c.b16.xlu1 %v613_v35, 256 }
  0x9b   : > { %520 = vbcast.lane.c.b16.xlu0 %v518_v36, 256  ;;  %643 = vbcast.lane.c.b16.xlu1 %v641_v38, 256 }
  0x9f   : > { %499 = vbcast.lane.c.b16.xlu0 %v497_v39, 256  ;;  %622 = vbcast.lane.c.b16.xlu1 %v620_v41, 256 }
  0xa3   : > { %527 = vbcast.lane.c.b16.xlu0 %v525_v42, 256  ;;  %650 = vbcast.lane.c.b16.xlu1 %v648_v43, 256 }
  0xa7   : > { %506 = vbcast.lane.c.b16.xlu0 %v504_v44, 256  ;;  %629 = vbcast.lane.c.b16.xlu1 %v627_v45, 256 }
  0xab   : > { %534 = vbcast.lane.c.b16.xlu0 %v532_v46, 256  ;;  %657 = vbcast.lane.c.b16.xlu1 %v655_v47, 256 }
  0xaf   : > { %513 = vbcast.lane.c.b16.xlu0 %v511_v48, 256  ;;  %636 = vbcast.lane.c.b16.xlu1 %v634_v50, 256 }
  0xb3   : > { %541 = vbcast.lane.c.b16.xlu0 %v539_v51, 256  ;;  %664 = vbcast.lane.c.b16.xlu1 %v662_v52, 256 }
  0xb7   : > { %548 = vbcast.lane.c.b16.xlu0 %v546_v53, 256  ;;  %671 = vbcast.lane.c.b16.xlu1 %v669_v54, 256 }
  0xed   : > { %v441_v55 = vpop.permute.xlu0 %440  ;;  %v451_v56 = vpop.permute.xlu1 %450 }
  0xf1   : > { %v564_v57 = vpop.permute.xlu0 %563  ;;  %v574_v60 = vpop.permute.xlu1 %573 }
  0xf2   : > { %v676_v58 = vsel %vm673_vm1, %v441_v55, %v564_v57  ;;  %v679_v62 = vsel %vm673_vm1, %v451_v56, %v574_v60 }
  0xf3   : > { %v724_v59 = vsel %vm722_vm2, %v676_v58, 1065369472  ;;  %v725_v0 = vsel %vm722_vm2, %v679_v62, 1065369472 }
  0xf4   : > { %v742_v61 = vsel %vm740_vm3, %v724_v59, 0  ;;  %v743_v2 = vsel %vm740_vm3, %v725_v0, 0 }
  0xf5   : > { %v759_v63 = vsel %vm758_vm4, %v742_v61, 0  ;;  %v458_v1 = vpop.permute.xlu0 %457  ;;  %v760_v4 = vsel %vm758_vm4, %v743_v2, 0  ;;  %v581_v5 = vpop.permute.xlu1 %580 }
  0xf6   : > { %v776_v3 = vsel %vm775_vm5, %v759_v63, 0  ;;  %v682_v7 = vsel %vm673_vm1, %v458_v1, %v581_v5  ;;  %v777_v13 = vsel %vm775_vm5, %v760_v4, 0 }
  0xf7   : > { %v793_v6 = vsel %vm792_vm6, %v776_v3, 0  ;;  %v726_v9 = vsel %vm722_vm2, %v682_v7, 1065369472  ;;  %v794_v18 = vsel %vm792_vm6, %v777_v13, 0 }
  0xf8   : > { %v810_v8 = vsel %vm809_vm7, %v793_v6, 0  ;;  %v744_v12 = vsel %vm740_vm3, %v726_v9, 0  ;;  %v811_v21 = vsel %vm809_vm7, %v794_v18, 0 }
  0xf9   : > { %1767 = vmatmul.mubr.msk.bf16.vlgmr.msra.gmra.mxu0 %vm832_vm8, %v810_v8  ;;  %v465_v10 = vpop.permute.xlu0 %464  ;;  %v588_v14 = vpop.permute.xlu1 %587  ;;  %v761_v16 = vsel %vm758_vm4, %v744_v12, 0 }
  0xfa   : > { %914 = vmatprep.mubr.bf16.mxu0 %v2292_v11  ;;  %v685_v15 = vsel %vm673_vm1, %v465_v10, %v588_v14  ;;  %v778_v22 = vsel %vm775_vm5, %v761_v16, 0 }
  0xfb   : > { %v727_v19 = vsel %vm722_vm2, %v685_v15, 1065369472  ;;  %v795_v26 = vsel %vm792_vm6, %v778_v22, 0 }
  0xfc   : > { %v745_v24 = vsel %vm740_vm3, %v727_v19, 0  ;;  %v812_v30 = vsel %vm809_vm7, %v795_v26, 0 }
  0xfd   : > { %v472_v17 = vpop.permute.xlu0 %471  ;;  %v595_v20 = vpop.permute.xlu1 %594  ;;  %v762_v28 = vsel %vm758_vm4, %v745_v24, 0 }
  0xfe   : > { %v688_v27 = vsel %vm673_vm1, %v472_v17, %v595_v20  ;;  %v779_v33 = vsel %vm775_vm5, %v762_v28, 0 }
  0xff   : > { %v728_v31 = vsel %vm722_vm2, %v688_v27, 1065369472  ;;  %v796_v37 = vsel %vm792_vm6, %v779_v33, 0 }
 0x100   : > { %v746_v35 = vsel %vm740_vm3, %v728_v31, 0  ;;  %v813_v41 = vsel %vm809_vm7, %v796_v37, 0 }
 0x101   : > { %1768 = vmatmul.mubr.msk.bf16.gmra.mxu0 %vm832_vm8, %v811_v21  ;;  %v479_v23 = vpop.permute.xlu0 %478  ;;  %v602_v25 = vpop.permute.xlu1 %601  ;;  %v763_v39 = vsel %vm758_vm4, %v746_v35, 0 }
 0x102   : > { %924 = vmatprep.mubr.bf16.mxu0 %v2292_v11  ;;  %v691_v38 = vsel %vm673_vm1, %v479_v23, %v602_v25  ;;  %v780_v45 = vsel %vm775_vm5, %v763_v39, 0 }
 0x103   : > { %v729_v42 = vsel %vm722_vm2, %v691_v38, 1065369472  ;;  %v797_v52 = vsel %vm792_vm6, %v780_v45, 0 }
 0x104   : > { %v747_v48 = vsel %vm740_vm3, %v729_v42, 0  ;;  %v814_v62 = vsel %vm809_vm7, %v797_v52, 0 }
 0x105   : > { %v486_v29 = vpop.permute.xlu0 %485  ;;  %v609_v32 = vpop.permute.xlu1 %608  ;;  %v764_v56 = vsel %vm758_vm4, %v747_v48, 0 }
 0x106   : > { %v694_v53 = vsel %vm673_vm1, %v486_v29, %v609_v32  ;;  %v781_v3 = vsel %vm775_vm5, %v764_v56, 0 }
 0x107   : > { %v730_v63 = vsel %vm722_vm2, %v694_v53, 1065369472  ;;  %v798_v14 = vsel %vm792_vm6, %v781_v3, 0 }
 0x108   : > { %v748_v8 = vsel %vm740_vm3, %v730_v63, 0  ;;  %v815_v24 = vsel %vm809_vm7, %v798_v14, 0  ;;  %v1975_v14 = vld [vmem:[#allocation9 + $0x28] sm:$0xff]  }
 0x109   : > { %1769 = vmatmul.mubr.msk.bf16.gmra.mxu0 %vm832_vm8, %v812_v30  ;;  %v493_v34 = vpop.permute.xlu0 %492  ;;  %v616_v36 = vpop.permute.xlu1 %615  ;;  %v765_v17 = vsel %vm758_vm4, %v748_v8, 0 }
 0x10a   : > { %934 = vmatprep.mubr.bf16.mxu0 %v2292_v11  ;;  %v697_v21 = vsel %vm673_vm1, %v493_v34, %v616_v36  ;;  %v782_v28 = vsel %vm775_vm5, %v765_v17, 0 }
 0x10b   : > { %v731_v30 = vsel %vm722_vm2, %v697_v21, 1065369472  ;;  %v799_v38 = vsel %vm792_vm6, %v782_v28, 0 }
 0x10c   : > { %v749_v39 = vsel %vm740_vm3, %v731_v30, 0 }
 0x10d   : > { %v521_v40 = vpop.permute.xlu0 %520  ;;  %v644_v43 = vpop.permute.xlu1 %643  ;;  %v766_v48 = vsel %vm758_vm4, %v749_v39, 0 }
 0x10e   : > { %v709_v44 = vsel %vm673_vm1, %v521_v40, %v644_v43 }
 0x10f   : > { %v735_v46 = vsel %vm722_vm2, %v709_v44, 1065369472 }
 0x110   : > { %v753_v49 = vsel %vm740_vm3, %v735_v46, 0 }
 0x111   : > { %1770 = vmatmul.mubr.msk.bf16.gmra.mxu0 %vm832_vm8, %v813_v41  ;;  %v500_v47 = vpop.permute.xlu0 %499  ;;  %v770_v50 = vsel %vm758_vm4, %v753_v49, 0  ;;  %v623_v51 = vpop.permute.xlu1 %622 }
 0x112   : > { %944 = vmatprep.mubr.bf16.mxu0 %v2292_v11  ;;  %v700_v54 = vsel %vm673_vm1, %v500_v47, %v623_v51  ;;  %v787_v55 = vsel %vm775_vm5, %v770_v50, 0  ;;  %v816_v47 = vsel %vm809_vm7, %v799_v38, 0 }
 0x113   : > { %v732_v57 = vsel %vm722_vm2, %v700_v54, 1065369472  ;;  %v804_v58 = vsel %vm792_vm6, %v787_v55, 0 }
 0x114   : > { %v750_v60 = vsel %vm740_vm3, %v732_v57, 0  ;;  %v821_v61 = vsel %vm809_vm7, %v804_v58, 0  ;;  %v783_v57 = vsel %vm775_vm5, %v766_v48, 0 }
 0x115   : > { %v528_v59 = vpop.permute.xlu0 %527  ;;  %v767_v0 = vsel %vm758_vm4, %v750_v60, 0  ;;  %v651_v1 = vpop.permute.xlu1 %650  ;;  %1778 = vmatmul.mubr.msk.bf16.vlgmr.msra.gmra.mxu1 %vm832_vm8, %v821_v61 }
 0x116   : > { %v712_v2 = vsel %vm673_vm1, %v528_v59, %v651_v1  ;;  %1024 = vmatprep.mubr.bf16.mxu1 %v2292_v11  ;;  %v784_v4 = vsel %vm775_vm5, %v767_v0, 0  ;;  %v800_v1 = vsel %vm792_vm6, %v783_v57, 0 }
 0x117   : > { %v736_v5 = vsel %vm722_vm2, %v712_v2, 1065369472  ;;  %v801_v7 = vsel %vm792_vm6, %v784_v4, 0 }
 0x118   : > { %v754_v9 = vsel %vm740_vm3, %v736_v5, 0  ;;  %v2637_v10 = vsel %vm809_vm7, %v801_v7, 0  ;;  %v817_v5 = vsel %vm809_vm7, %v800_v1, 0 }
 0x119   : > { %1771 = vmatmul.mubr.msk.bf16.gmra.mxu0 %vm832_vm8, %v814_v62  ;;  %v507_v6 = vpop.permute.xlu0 %506  ;;  %v771_v12 = vsel %vm758_vm4, %v754_v9, 0  ;;  %v630_v13 = vpop.permute.xlu1 %629  ;;  %v1973_v9 = vld [vmem:[#allocation9 + $0x38] sm:$0xff]  }
 0x11a   : > { %954 = vmatprep.mubr.bf16.mxu0 %v2292_v11  ;;  %v703_v15 = vsel %vm673_vm1, %v507_v6, %v630_v13  ;;  %v788_v16 = vsel %vm775_vm5, %v771_v12, 0  ;;  %v2293_v12 = vmov 0.0   ;;  %v1974_v13 = vld [vmem:[#allocation9 + $0x30] sm:$0xff]  }
 0x11b   : > { %v733_v18 = vsel %vm722_vm2, %v703_v15, 1065369472  ;;  %v805_v19 = vsel %vm792_vm6, %v788_v16, 0  ;;  %1824 = vmatprep.subr.bf16.mxu1 %v2293_v12  ;;  %v1976_v16 = vld [vmem:[#allocation9 + $0x20] sm:$0xff]  }
 0x11c   : > { %v751_v22 = vsel %vm740_vm3, %v733_v18, 0  ;;  %v822_v23 = vsel %vm809_vm7, %v805_v19, 0  ;;  %1825 = vmatpush3.bf16.msra.mxu1 %v1973_v9 }
 0x11d   : > { %v535_v20 = vpop.permute.xlu0 %534  ;;  %v768_v25 = vsel %vm758_vm4, %v751_v22, 0  ;;  %v658_v26 = vpop.permute.xlu1 %657  ;;  %1779 = vmatmul.mubr.msk.bf16.gmra.mxu1 %vm832_vm8, %v822_v23  ;;  %1826 = vmatprep.subr.bf16.mxu1 %v2293_v12  ;;  %v1977_v22 = vld [vmem:[#allocation9 + $0x18] sm:$0xff]  }
 0x11e   : > { %v715_v27 = vsel %vm673_vm1, %v535_v20, %v658_v26  ;;  %1034 = vmatprep.mubr.bf16.mxu1 %v2292_v11  ;;  %v785_v29 = vsel %vm775_vm5, %v768_v25, 0  ;;  %v1978_v25 = vld [vmem:[#allocation9 + $0x10] sm:$0xff]  }
 0x11f   : > { %v737_v31 = vsel %vm722_vm2, %v715_v27, 1065369472  ;;  %v802_v33 = vsel %vm792_vm6, %v785_v29, 0 }
 0x120   : > { %v755_v34 = vsel %vm740_vm3, %v737_v31, 0  ;;  %v819_v35 = vsel %vm809_vm7, %v802_v33, 0  ;;  %1827 = vmatpush3.bf16.msra.mxu1 %v1974_v13  ;;  %v1979_v31 = vld [vmem:[#allocation9 + $0x8] sm:$0xff]  }
 0x121   : > { %1772 = vmatmul.mubr.msk.bf16.gmra.mxu0 %vm832_vm8, %v815_v24  ;;  %v514_v32 = vpop.permute.xlu0 %513  ;;  %v772_v36 = vsel %vm758_vm4, %v755_v34, 0  ;;  %v637_v37 = vpop.permute.xlu1 %636  ;;  %1828 = vmatprep.subr.bf16.mxu1 %v2293_v12  ;;  %v1980_v34 = vld [vmem:[#allocation9] sm:$0xff]  }
 0x122   : > { %964 = vmatprep.mubr.bf16.mxu0 %v2292_v11  ;;  %v706_v40 = vsel %vm673_vm1, %v514_v32, %v637_v37  ;;  %v789_v41 = vsel %vm775_vm5, %v772_v36, 0 }
 0x123   : > { %v734_v42 = vsel %vm722_vm2, %v706_v40, 1065369472  ;;  %v806_v43 = vsel %vm792_vm6, %v789_v41, 0 }
 0x124   : > { %v752_v45 = vsel %vm740_vm3, %v734_v42, 0  ;;  %v823_v46 = vsel %vm809_vm7, %v806_v43, 0  ;;  %1829 = vmatpush3.bf16.msra.mxu1 %v1975_v14 }
 0x125   : > { %v542_v44 = vpop.permute.xlu0 %541  ;;  %v769_v49 = vsel %vm758_vm4, %v752_v45, 0  ;;  %v665_v50 = vpop.permute.xlu1 %664  ;;  %1780 = vmatmul.mubr.msk.bf16.gmra.mxu1 %vm832_vm8, %v823_v46  ;;  %1830 = vmatprep.subr.bf16.mxu1 %v2293_v12 }
 0x126   : > { %v718_v51 = vsel %vm673_vm1, %v542_v44, %v665_v50  ;;  %1044 = vmatprep.mubr.bf16.mxu1 %v2292_v11  ;;  %v786_v52 = vsel %vm775_vm5, %v769_v49, 0 }
 0x127   : > { %v738_v53 = vsel %vm722_vm2, %v718_v51, 1065369472  ;;  %v803_v55 = vsel %vm792_vm6, %v786_v52, 0 }
 0x128   : > { %v756_v56 = vsel %vm740_vm3, %v738_v53, 0  ;;  %v820_v58 = vsel %vm809_vm7, %v803_v55, 0  ;;  %1831 = vmatpush3.bf16.msra.mxu1 %v1976_v16 }
 0x129   : > { %1773 = vmatmul.mubr.msk.bf16.gmra.mxu0 %vm832_vm8, %v816_v47  ;;  %v549_v54 = vpop.permute.xlu0 %548  ;;  %v773_v59 = vsel %vm758_vm4, %v756_v56, 0  ;;  %v672_v60 = vpop.permute.xlu1 %671  ;;  %1832 = vmatprep.subr.bf16.mxu1 %v2293_v12 }
 0x12a   : > { %974 = vmatprep.mubr.bf16.mxu0 %v2292_v11  ;;  %v790_v61 = vsel %vm775_vm5, %v773_v59, 0  ;;  %v721_v62 = vsel %vm673_vm1, %v549_v54, %v672_v60 }
 0x12b   : > { %v807_v63 = vsel %vm792_vm6, %v790_v61, 0  ;;  %v739_v0 = vsel %vm722_vm2, %v721_v62, 1065369472 }
 0x12c   : > { %v824_v2 = vsel %vm809_vm7, %v807_v63, 0  ;;  %v757_v3 = vsel %vm740_vm3, %v739_v0, 0  ;;  %1833 = vmatpush3.bf16.msra.mxu1 %v1977_v22 }
 0x12d   : > { %1781 = vmatmul.mubr.msk.bf16.gmra.mxu1 %vm832_vm8, %v824_v2  ;;  %v774_v4 = vsel %vm758_vm4, %v757_v3, 0  ;;  %1834 = vmatprep.subr.bf16.mxu1 %v2293_v12 }
 0x12e   : > { %1054 = vmatprep.mubr.bf16.mxu1 %v2292_v11  ;;  %v791_v6 = vsel %vm775_vm5, %v774_v4, 0 }
 0x12f   : > { %v808_v7 = vsel %vm792_vm6, %v791_v6, 0 }
 0x130   : > { %v825_v8 = vsel %vm809_vm7, %v808_v7, 0  ;;  %1835 = vmatpush3.bf16.msra.mxu1 %v1978_v25 }
 0x131   : > { %1774 = vmatmul.mubr.msk.bf16.gmra.mxu0 %vm832_vm8, %v817_v5  ;;  %1836 = vmatprep.subr.bf16.mxu1 %v2293_v12 }
 0x132   : > { %984 = vmatprep.mubr.bf16.mxu0 %v2292_v11 }
 0x134   : > { %1837 = vmatpush3.bf16.msra.mxu1 %v1979_v31 }
 0x135   : > { %1782 = vmatmul.mubr.msk.bf16.gmra.mxu1 %vm832_vm8, %v825_v8  ;;  %1838 = vmatprep.subr.bf16.mxu1 %v2293_v12 }
 0x136   : > { %1840 = vmatprep.mubr.msk.bf16.mxu1 %vm2294_vm9, %v2293_v12 }
 0x138   : > { %1839 = vmatpush3.bf16.msra.mxu1 %v1980_v34 }
 0x139   : > { %1775 = vmatmul.mubr.msk.bf16.gmra.mxu0 %vm832_vm8, %v2637_v10  ;;  %1844 = vmatprep.subr.bf16.mxu1 %v2293_v12 }
 0x13a   : > { %994 = vmatprep.mubr.bf16.mxu0 %v2292_v11 }
 0x141   : > { %1776 = vmatmul.mubr.msk.bf16.gmra.mxu0 %vm832_vm8, %v819_v35 }
 0x142   : > { %1004 = vmatprep.mubr.bf16.mxu0 %v2292_v11 }
 0x149   : > { %1777 = vmatmul.mubr.msk.bf16.gmra.mxu0 %vm832_vm8, %v820_v58 }
 0x1b9   : > { %v906_v10 = vpop.f32.mrf.mxu0 }
 0x1bb   : > { %v2713_v15 = vpop.f32.mrf.mxu0 }
 0x1bd   : > { %v910_v11 = vpop.f32.mrf.mxu0 }
 0x1be   : > { %v1065_v17 = vpack.c.bf16 %v910_v11, %v906_v10 }
 0x1bf   : > { %v2716_v18 = vpop.f32.mrf.mxu0 }
 0x1c0   : > { %v1097_v19 = vmul.bf16 1056980736, %v1065_v17  ;;  %v1066_v20 = vpack.c.bf16 %v2716_v18, %v2713_v15 }
 0x1c1   : > { %v916_v21 = vpop.f32.mrf.mxu0 }
 0x1c2   : > { %1989 = vtanh.bf16 %v1097_v19 }
 0x1c3   : > { %v2721_v23 = vpop.f32.mrf.mxu0 }
 0x1c5   : > { %v920_v24 = vpop.f32.mrf.mxu0 }
 0x1c6   : > { %v1067_v26 = vpack.c.bf16 %v920_v24, %v916_v21 }
 0x1c7   : > { %v2724_v27 = vpop.f32.mrf.mxu0 }
 0x1c8   : > { %v1098_v28 = vmul.bf16 1056980736, %v1067_v26  ;;  %v1068_v29 = vpack.c.bf16 %v2724_v27, %v2721_v23 }
 0x1c9   : > { %v926_v30 = vpop.f32.mrf.mxu0 }
 0x1ca   : > { %1991 = vtanh.bf16 %v1098_v28 }
 0x1cb   : > { %v2729_v32 = vpop.f32.mrf.mxu0 }
 0x1cd   : > { %v930_v33 = vpop.f32.mrf.mxu0 }
 0x1ce   : > { %v1069_v35 = vpack.c.bf16 %v930_v33, %v926_v30 }
 0x1cf   : > { %v2732_v36 = vpop.f32.mrf.mxu0 }
 0x1d0   : > { %v1990_v37 = vpop.eup %1989  ;;  %v1099_v38 = vmul.bf16 1056980736, %v1069_v35  ;;  %v1070_v39 = vpack.c.bf16 %v2732_v36, %v2729_v32 }
 0x1d1   : > { %v1129_v40 = vmul.bf16 1056980736, %v1990_v37  ;;  %v936_v41 = vpop.f32.mrf.mxu0 }
 0x1d2   : > { %1993 = vtanh.bf16 %v1099_v38 }
 0x1d3   : > { %v1145_v42 = vadd.bf16 1056980736, %v1129_v40  ;;  %v2739_v43 = vpop.f32.mrf.mxu0 }
 0x1d5   : > { %v1161_v44 = vmul.bf16 %v1145_v42, %v1065_v17  ;;  %v940_v45 = vpop.f32.mrf.mxu0  ;;  %v2743_v49 = vpop.f32.mrf.mxu1 }
 0x1d6   : > { %v1071_v46 = vpack.c.bf16 %v940_v45, %v936_v41 }
 0x1d7   : > { %v1177_v47 = vmul.bf16 1056980736, %v1161_v44  ;;  %v2741_v48 = vpop.f32.mrf.mxu0  ;;  %v2747_v55 = vpop.f32.mrf.mxu1 }
 0x1d8   : > { %v1992_v50 = vpop.eup %1991  ;;  %v1100_v51 = vmul.bf16 1056980736, %v1071_v46  ;;  %v1072_v52 = vpack.c.bf16 %v2741_v48, %v2739_v43 }
 0x1d9   : > { %1995 = vtanh.bf16 %v1177_v47  ;;  %v1130_v53 = vmul.bf16 1056980736, %v1992_v50  ;;  %v946_v54 = vpop.f32.mrf.mxu0  ;;  %v2751_v58 = vpop.f32.mrf.mxu1 }
 0x1da   : > { %1997 = vtanh.bf16 %v1100_v51 }
 0x1db   : > { %v1146_v56 = vadd.bf16 1056980736, %v1130_v53  ;;  %v2749_v57 = vpop.f32.mrf.mxu0  ;;  %v2755_v61 = vpop.f32.mrf.mxu1 }
 0x1dc   : > { %v1088_v63 = vpack.c.bf16 %v2755_v61, %v2747_v55 }
 0x1dd   : > { %v2753_v59 = vmul.bf16 %v1146_v56, %v1067_v26  ;;  %v950_v60 = vpop.f32.mrf.mxu0  ;;  %v2762_v2 = vpop.f32.mrf.mxu1 }
 0x1de   : > { %v1073_v62 = vpack.c.bf16 %v950_v60, %v946_v54 }
 0x1df   : > { %v1178_v0 = vmul.bf16 1056980736, %v2753_v59  ;;  %v2760_v1 = vpop.f32.mrf.mxu0  ;;  %v2766_v8 = vpop.f32.mrf.mxu1 }
 0x1e0   : > { %v1994_v3 = vpop.eup %1993  ;;  %v1101_v4 = vmul.bf16 1056980736, %v1073_v62  ;;  %v1074_v5 = vpack.c.bf16 %v2760_v1, %v2749_v57 }
 0x1e1   : > { %1999 = vtanh.bf16 %v1178_v0  ;;  %v1131_v6 = vmul.bf16 1056980736, %v1994_v3  ;;  %v956_v7 = vpop.f32.mrf.mxu0  ;;  %v1030_v10 = vpop.f32.mrf.mxu1 }
 0x1e2   : > { %2001 = vtanh.bf16 %v1101_v4 }
 0x1e3   : > { %v1147_v9 = vadd.bf16 1056980736, %v1131_v6  ;;  %v2768_v13 = vpop.f32.mrf.mxu0  ;;  %v2772_v16 = vpop.f32.mrf.mxu1 }
 0x1e5   : > { %v2770_v14 = vmul.bf16 %v1147_v9, %v1069_v35  ;;  %v960_v11 = vpop.f32.mrf.mxu0  ;;  %v2779_v24 = vpop.f32.mrf.mxu1 }
 0x1e6   : > { %v2774_v17 = vpack.c.bf16 %v960_v11, %v956_v7 }
 0x1e7   : > { %v1996_v19 = vpop.eup %1995  ;;  %v1179_v21 = vmul.bf16 1056980736, %v2770_v14  ;;  %v2777_v22 = vpop.f32.mrf.mxu0 }
 0x1e8   : > { %v1998_v25 = vpop.eup %1997  ;;  %v1209_v26 = vmul.bf16 1056980736, %v1996_v19  ;;  %v1102_v28 = vmul.bf16 1056980736, %v2774_v17  ;;  %v1076_v30 = vpack.c.bf16 %v2777_v22, %v2768_v13  ;;  %v2784_v34 = vpop.f32.mrf.mxu1 }
 0x1e9   : > { %2003 = vtanh.bf16 %v1179_v21  ;;  %v1132_v31 = vmul.bf16 1056980736, %v1998_v25  ;;  %v966_v33 = vpop.f32.mrf.mxu0 }
 0x1ea   : > { %v1225_v35 = vadd.bf16 1056980736, %v1209_v26  ;;  %2005 = vtanh.bf16 %v1102_v28  ;;  %v1040_v40 = vpop.f32.mrf.mxu1  ;;  %v2817_v28 = vpack.c.bf16 %v2751_v58, %v2743_v49 }
 0x1eb   : > { %v1148_v37 = vadd.bf16 1056980736, %v1132_v31  ;;  %v2786_v38 = vpop.f32.mrf.mxu0 }
 0x1ec   : > { %v1241_v41 = vmul.bf16 %v1225_v35, %v1161_v44  ;;  %v2790_v47 = vpop.f32.mrf.mxu1 }
 0x1ed   : > { %v2788_v42 = vmul.bf16 %v1148_v37, %v1071_v46  ;;  %v970_v45 = vpop.f32.mrf.mxu0 }
 0x1ee   : > { %v1257_v50 = vmul.bf16 %v1241_v41, %v1066_v20  ;;  %v2795_v51 = vpack.c.bf16 %v970_v45, %v966_v33  ;;  %v1046_v60 = vpop.f32.mrf.mxu1 }
 0x1ef   : > { %v2000_v53 = vpop.eup %1999  ;;  %v1180_v54 = vmul.bf16 1056980736, %v2788_v42  ;;  %v2798_v56 = vpop.f32.mrf.mxu0 }
 0x1f0   : > { %v2002_v0 = vpop.eup %2001  ;;  %v1210_v3 = vmul.bf16 1056980736, %v2000_v53  ;;  %v1103_v46 = vmul.bf16 1056980736, %v2795_v51  ;;  %v2801_v6 = vpop.f32.mrf.mxu1  ;;  %v1078_v15 = vpack.c.bf16 %v2798_v56, %v2786_v38  ;;  %v1273_v35 = vunpack.c.l.bf16 %v1257_v50 }
 0x1f1   : > { %2007 = vtanh.bf16 %v1180_v54  ;;  %v1133_v44 = vmul.bf16 1056980736, %v2002_v0  ;;  %v976_v4 = vpop.f32.mrf.mxu0  ;;  %v1274_v53 = vunpack.c.h.bf16 %v1257_v50 }
 0x1f2   : > { %v1226_v7 = vadd.bf16 1056980736, %v1210_v3  ;;  %2009 = vtanh.bf16 %v1103_v46  ;;  %v1050_v9 = vpop.f32.mrf.mxu1  ;;  %v1108_v46 = vmul.bf16 1056980736, %v2817_v28 }
 0x1f3   : > { %v1149_v18 = vadd.bf16 1056980736, %v1133_v44  ;;  %v2805_v20 = vpop.f32.mrf.mxu0 }
 0x1f4   : > { %v1242_v11 = vmul.bf16 %v1226_v7, %v2753_v59  ;;  %v2810_v25 = vpop.f32.mrf.mxu1  ;;  %v2823_v59 = vpack.c.bf16 %v1030_v10, %v2762_v2 }
 0x1f5   : > { %v2808_v19 = vmul.bf16 %v1149_v18, %v1073_v62  ;;  %v980_v21 = vpop.f32.mrf.mxu0  ;;  %v2836_v18 = vpack.c.bf16 %v1040_v40, %v2779_v24 }
 0x1f6   : > { %v1258_v26 = vmul.bf16 %v1242_v11, %v1068_v29  ;;  %v2819_v31 = vpack.c.bf16 %v980_v21, %v976_v4  ;;  %v1056_v41 = vpop.f32.mrf.mxu1  ;;  %v1109_v10 = vmul.bf16 1056980736, %v2823_v59 }
 0x1f7   : > { %v2004_v33 = vpop.eup %2003  ;;  %v1181_v37 = vmul.bf16 1056980736, %v2808_v19  ;;  %v2825_v62 = vpop.f32.mrf.mxu0 }
 0x1f8   : > { %v2006_v45 = vpop.eup %2005  ;;  %v1277_v23 = vunpack.c.l.bf16 %v1258_v26  ;;  %v1278_v27 = vunpack.c.h.bf16 %v1258_v26  ;;  %v1211_v29 = vmul.bf16 1056980736, %v2004_v33  ;;  %v1104_v58 = vmul.bf16 1056980736, %v2819_v31  ;;  %v2829_v2 = vpop.f32.mrf.mxu1 }
 0x1f9   : > { %2011 = vtanh.bf16 %v1181_v37  ;;  %v1134_v49 = vmul.bf16 1056980736, %v2006_v45  ;;  %v986_v54 = vpop.f32.mrf.mxu0 }
 0x1fa   : > { %v1279_v0 = vadd.f32 %v1277_v23, %v1273_v35  ;;  %v1280_v3 = vadd.f32 %v1278_v27, %v1274_v53  ;;  %v1227_v44 = vadd.bf16 1056980736, %v1211_v29  ;;  %2013 = vtanh.bf16 %v1104_v58  ;;  %v1060_v33 = vpop.f32.mrf.mxu1 }
 0x1fb   : > { %v1150_v4 = vadd.bf16 1056980736, %v1134_v49  ;;  %v2832_v50 = vpop.f32.mrf.mxu0  ;;  %2015 = vtanh.bf16 %v1108_v46  ;;  %v1110_v23 = vmul.bf16 1056980736, %v2836_v18  ;;  %v2852_v32 = vpack.c.bf16 %v1060_v33, %v1056_v41 }
 0x1fc   : > { %v1243_v7 = vmul.bf16 %v1227_v44, %v2770_v14  ;;  %2017 = vtanh.bf16 %v1109_v10  ;;  %v2847_v14 = vpack.c.bf16 %v1050_v9, %v1046_v60  ;;  %v1062_v61 = vpop.f32.mrf.mxu1 }
 0x1fd   : > { %v2839_v11 = vmul.bf16 %v1150_v4, %v2774_v17  ;;  %v990_v21 = vpop.f32.mrf.mxu0  ;;  %v1112_v10 = vmul.bf16 1056980736, %v2852_v32 }
 0x1fe   : > { %v1259_v26 = vmul.bf16 %v1243_v7, %v1070_v39  ;;  %v2844_v35 = vpack.c.bf16 %v990_v21, %v986_v54  ;;  %v1111_v60 = vmul.bf16 1056980736, %v2847_v14 }
 0x1ff   : > { %v2008_v37 = vpop.eup %2007  ;;  %v1182_v45 = vmul.bf16 1056980736, %v2839_v11  ;;  %v2849_v24 = vpop.f32.mrf.mxu0 }
 0x200   : > { %v1281_v40 = vunpack.c.l.bf16 %v1259_v26  ;;  %v1282_v17 = vunpack.c.h.bf16 %v1259_v26  ;;  %v1212_v53 = vmul.bf16 1056980736, %v2008_v37  ;;  %v2010_v27 = vpop.eup %2009  ;;  %v1105_v36 = vmul.bf16 1056980736, %v2844_v35 }
 0x201   : > { %2019 = vtanh.bf16 %v1182_v45  ;;  %v996_v39 = vpop.f32.mrf.mxu0  ;;  %v1135_v54 = vmul.bf16 1056980736, %v2010_v27 }
 0x202   : > { %v1283_v29 = vadd.f32 %v1281_v40, %v1279_v0  ;;  %v1284_v49 = vadd.f32 %v1282_v17, %v1280_v3  ;;  %v1228_v58 = vadd.bf16 1056980736, %v1212_v53  ;;  %2021 = vtanh.bf16 %v1105_v36 }
 0x203   : > { %v2856_v9 = vpop.f32.mrf.mxu0  ;;  %2023 = vtanh.bf16 %v1110_v23  ;;  %v1151_v46 = vadd.bf16 1056980736, %v1135_v54 }
 0x204   : > { %v1244_v44 = vmul.bf16 %v1228_v58, %v2788_v42  ;;  %2025 = vtanh.bf16 %v1111_v60 }
 0x205   : > { %v1000_v41 = vpop.f32.mrf.mxu0  ;;  %v2864_v0 = vmul.bf16 %v1151_v46, %v2795_v51  ;;  %2027 = vtanh.bf16 %v1112_v10 }
 0x206   : > { %v1260_v4 = vmul.bf16 %v1244_v44, %v1072_v52  ;;  %v2866_v3 = vpack.c.bf16 %v1000_v41, %v996_v39 }
 0x207   : > { %v2012_v7 = vpop.eup %2011  ;;  %v2868_v21 = vpop.f32.mrf.mxu0  ;;  %v1183_v45 = vmul.bf16 1056980736, %v2864_v0 }
 0x208   : > { %v1285_v26 = vunpack.c.l.bf16 %v1260_v4  ;;  %v1286_v42 = vunpack.c.h.bf16 %v1260_v4  ;;  %v1213_v33 = vmul.bf16 1056980736, %v2012_v7  ;;  %v2014_v37 = vpop.eup %2013  ;;  %v1106_v40 = vmul.bf16 1056980736, %v2866_v3 }
 0x209   : > { %v1006_v43 = vpop.f32.mrf.mxu0  ;;  %2029 = vtanh.bf16 %v1183_v45  ;;  %v1136_v17 = vmul.bf16 1056980736, %v2014_v37  ;;  %v2016_v23 = vpop.eup %2015 }
 0x20a   : > { %v1287_v48 = vadd.f32 %v1285_v26, %v1283_v29  ;;  %v1288_v52 = vadd.f32 %v1286_v42, %v1284_v49  ;;  %v1229_v51 = vadd.bf16 1056980736, %v1213_v33  ;;  %2031 = vtanh.bf16 %v1106_v40  ;;  %v2018_v36 = vpop.eup %2017 }
 0x20b   : > { %v2872_v53 = vpop.f32.mrf.mxu0  ;;  %v1152_v39 = vadd.bf16 1056980736, %v1136_v17  ;;  %v1140_v44 = vmul.bf16 1056980736, %v2016_v23 }
 0x20c   : > { %v1245_v27 = vmul.bf16 %v1229_v51, %v2808_v19  ;;  %v1141_v19 = vmul.bf16 1056980736, %v2018_v36 }
 0x20d   : > { %v1010_v58 = vpop.f32.mrf.mxu0  ;;  %v2879_v29 = vmul.bf16 %v1152_v39, %v2819_v31  ;;  %v1156_v31 = vadd.bf16 1056980736, %v1140_v44 }
 0x20e   : > { %v1261_v54 = vmul.bf16 %v1245_v27, %v1074_v5  ;;  %v2881_v49 = vpack.c.bf16 %v1010_v58, %v1006_v43  ;;  %v1157_v40 = vadd.bf16 1056980736, %v1141_v19 }
 0x20f   : > { %v2020_v60 = vpop.eup %2019  ;;  %v1184_v7 = vmul.bf16 1056980736, %v2879_v29 }
 0x210   : > { %v1289_v46 = vunpack.c.l.bf16 %v1261_v54  ;;  %v1290_v10 = vunpack.c.h.bf16 %v1261_v54  ;;  %v1214_v41 = vmul.bf16 1056980736, %v2020_v60  ;;  %v2022_v4 = vpop.eup %2021  ;;  %v1107_v26 = vmul.bf16 1056980736, %v2881_v49 }
 0x211   : > { %v2024_v42 = vpop.eup %2023  ;;  %2033 = vtanh.bf16 %v1184_v7  ;;  %v1137_v5 = vmul.bf16 1056980736, %v2022_v4  ;;  %v2896_v58 = vmul.bf16 %v1157_v40, %v2823_v59 }
 0x212   : > { %v1291_v33 = vadd.f32 %v1289_v46, %v1287_v48  ;;  %v1292_v57 = vadd.f32 %v1290_v10, %v1288_v52  ;;  %v1230_v1 = vadd.bf16 1056980736, %v1214_v41  ;;  %2035 = vtanh.bf16 %v1107_v26  ;;  %v2026_v45 = vpop.eup %2025 }
 0x213   : > { %v1142_v43 = vmul.bf16 1056980736, %v2024_v42  ;;  %v1153_v51 = vadd.bf16 1056980736, %v1137_v5  ;;  %v2028_v23 = vpop.eup %2027  ;;  %v2893_v48 = vmul.bf16 %v1156_v31, %v2817_v28  ;;  %v1143_v39 = vmul.bf16 1056980736, %v2026_v45 }
 0x214   : > { %v1246_v37 = vmul.bf16 %v1230_v1, %v2839_v11  ;;  %v1144_v46 = vmul.bf16 1056980736, %v2028_v23  ;;  %v1189_v4 = vmul.bf16 1056980736, %v2896_v58 }
 0x215   : > { %v2890_v27 = vmul.bf16 %v1153_v51, %v2844_v35  ;;  %v1158_v54 = vadd.bf16 1056980736, %v1142_v43  ;;  %v1188_v28 = vmul.bf16 1056980736, %v2893_v48  ;;  %v1159_v41 = vadd.bf16 1056980736, %v1143_v39 }
 0x216   : > { %v1262_v17 = vmul.bf16 %v1246_v37, %v1076_v30  ;;  %v1160_v26 = vadd.bf16 1056980736, %v1144_v46  ;;  %v1080_v51 = vpack.c.bf16 %v2825_v62, %v2805_v20 }
 0x217   : > { %v2030_v11 = vpop.eup %2029  ;;  %v1185_v60 = vmul.bf16 1056980736, %v2890_v27  ;;  %v2902_v19 = vmul.bf16 %v1158_v54, %v2836_v18 }
 0x218   : > { %v1293_v52 = vunpack.c.l.bf16 %v1262_v17  ;;  %v1294_v36 = vunpack.c.h.bf16 %v1262_v17  ;;  %v2032_v44 = vpop.eup %2031  ;;  %v1215_v30 = vmul.bf16 1056980736, %v2030_v11  ;;  %v2914_v40 = vmul.bf16 %v1160_v26, %v2852_v32 }
 0x219   : > { %2037 = vtanh.bf16 %v1185_v60  ;;  %v1138_v35 = vmul.bf16 1056980736, %v2032_v44  ;;  %v1190_v5 = vmul.bf16 1056980736, %v2902_v19 }
 0x21a   : > { %v1295_v13 = vadd.f32 %v1293_v52, %v1291_v33  ;;  %v1296_v22 = vadd.f32 %v1294_v36, %v1292_v57  ;;  %v1231_v10 = vadd.bf16 1056980736, %v1215_v30  ;;  %2039 = vtanh.bf16 %v1188_v28 }
 0x21b   : > { %v1154_v59 = vadd.bf16 1056980736, %v1138_v35  ;;  %v2910_v57 = vmul.bf16 %v1159_v41, %v2847_v14  ;;  %2041 = vtanh.bf16 %v1189_v4  ;;  %v1192_v23 = vmul.bf16 1056980736, %v2914_v40 }
 0x21c   : > { %v1247_v7 = vmul.bf16 %v1231_v10, %v2864_v0  ;;  %v1082_v4 = vpack.c.bf16 %v2849_v24, %v2832_v50 }
 0x21d   : > { %v1170_v42 = vmul.bf16 %v1154_v59, %v2866_v3  ;;  %v1191_v56 = vmul.bf16 1056980736, %v2910_v57 }
 0x21e   : > { %v1263_v33 = vmul.bf16 %v1247_v7, %v1078_v15 }
 0x21f   : > { %v2034_v1 = vpop.eup %2033  ;;  %v1186_v18 = vmul.bf16 1056980736, %v1170_v42 }
 0x220   : > { %v2036_v31 = vpop.eup %2035  ;;  %v1297_v37 = vunpack.c.l.bf16 %v1263_v33  ;;  %v1298_v45 = vunpack.c.h.bf16 %v1263_v33  ;;  %v1216_v0 = vmul.bf16 1056980736, %v2034_v1 }
 0x221   : > { %2043 = vtanh.bf16 %v1186_v18  ;;  %v1139_v3 = vmul.bf16 1056980736, %v2036_v31 }
 0x222   : > { %v1299_v43 = vadd.f32 %v1297_v37, %v1295_v13  ;;  %v1300_v38 = vadd.f32 %v1298_v45, %v1296_v22  ;;  %v1232_v15 = vadd.bf16 1056980736, %v1216_v0  ;;  %2045 = vtanh.bf16 %v1190_v5 }
 0x223   : > { %v1155_v14 = vadd.bf16 1056980736, %v1139_v3  ;;  %2047 = vtanh.bf16 %v1191_v56  ;;  %v1084_v5 = vpack.c.bf16 %v2868_v21, %v2856_v9 }
 0x224   : > { %v1248_v17 = vmul.bf16 %v1232_v15, %v2879_v29  ;;  %2049 = vtanh.bf16 %v1192_v23 }
 0x225   : > { %v1171_v52 = vmul.bf16 %v1155_v14, %v2881_v49 }
 0x226   : > { %v1264_v32 = vmul.bf16 %v1248_v17, %v1080_v51 }
 0x227   : > { %v2038_v36 = vpop.eup %2037  ;;  %v1187_v39 = vmul.bf16 1056980736, %v1171_v52 }
 0x228   : > { %v1301_v11 = vunpack.c.l.bf16 %v1264_v32  ;;  %v1302_v54 = vunpack.c.h.bf16 %v1264_v32  ;;  %v1217_v13 = vmul.bf16 1056980736, %v2038_v36  ;;  %v2040_v22 = vpop.eup %2039 }
 0x229   : > { %2051 = vtanh.bf16 %v1187_v39  ;;  %v2042_v30 = vpop.eup %2041  ;;  %v1220_v46 = vmul.bf16 1056980736, %v2040_v22 }
 0x22a   : > { %v1303_v60 = vadd.f32 %v1301_v11, %v1299_v43  ;;  %v1304_v44 = vadd.f32 %v1302_v54, %v1300_v38  ;;  %v1233_v20 = vadd.bf16 1056980736, %v1217_v13  ;;  %v1221_v10 = vmul.bf16 1056980736, %v2042_v30  ;;  %v1012_v43 = vpop.f32.mrf.mxu0 }
 0x22b   : > { %v1236_v7 = vadd.bf16 1056980736, %v1220_v46  ;;  %v1086_v9 = vpack.c.bf16 %v1012_v43, %v2872_v53  ;;  %v1092_v54 = vpack.c.bf16 %v2790_v47, %v2784_v34  ;;  %v1096_v34 = vpack.c.bf16 %v1062_v61, %v2829_v2  ;;  %v1783_v43 = vld [vmem:[%s3003_s4] ss:$0 sm:$0xff] }
 0x22c   : > { %v1249_v49 = vmul.bf16 %v1233_v20, %v2890_v27  ;;  %v1237_v31 = vadd.bf16 1056980736, %v1221_v10 }
 0x22d   : > { %v1252_v27 = vmul.bf16 %v1236_v7, %v2893_v48  ;;  %v1090_v48 = vpack.c.bf16 %v2772_v16, %v2766_v8  ;;  %v1094_v8 = vpack.c.bf16 %v2810_v25, %v2801_v6 }
 0x22e   : > { %v1265_v1 = vmul.bf16 %v1249_v49, %v1082_v4 }
 0x22f   : > { %v2044_v62 = vpop.eup %2043  ;;  %v1268_v17 = vmul.bf16 %v1252_v27, %v1088_v63  ;;  %v1987_v27 = vld [vmem:[#allocation11 + $0x8] sm:$0xff]  }
 0x230   : > { %v1218_v29 = vmul.bf16 1056980736, %v2044_v62  ;;  %v2046_v35 = vpop.eup %2045  ;;  %v1305_v38 = vunpack.c.l.bf16 %v1265_v1  ;;  %v1306_v56 = vunpack.c.h.bf16 %v1265_v1 }
 0x231   : > { %v2048_v41 = vpop.eup %2047  ;;  %v1222_v26 = vmul.bf16 1056980736, %v2046_v35  ;;  %v1317_v63 = vunpack.c.l.bf16 %v1268_v17  ;;  %v1318_v16 = vunpack.c.h.bf16 %v1268_v17 }
 0x232   : > { %v1234_v28 = vadd.bf16 1056980736, %v1218_v29  ;;  %v2050_v33 = vpop.eup %2049  ;;  %v1223_v37 = vmul.bf16 1056980736, %v2048_v41  ;;  %v1307_v32 = vadd.f32 %v1305_v38, %v1303_v60  ;;  %v1308_v36 = vadd.f32 %v1306_v56, %v1304_v44 }
 0x233   : > { %v1238_v3 = vadd.bf16 1056980736, %v1222_v26  ;;  %v1224_v24 = vmul.bf16 1056980736, %v2050_v33 }
 0x234   : > { %v1250_v59 = vmul.bf16 %v1234_v28, %v1170_v42  ;;  %v1253_v42 = vmul.bf16 %v1237_v31, %v2896_v58  ;;  %v1239_v15 = vadd.bf16 1056980736, %v1223_v37  ;;  %v1983_v31 = vld [vmem:[#allocation11 + $0x28] sm:$0xff]   ;;  %v1984_v37 = vld [vmem:[#allocation11 + $0x20] sm:$0xff]  }
 0x235   : > { %v1254_v23 = vmul.bf16 %v1238_v3, %v2902_v19  ;;  %v1240_v11 = vadd.bf16 1056980736, %v1224_v24  ;;  %v1988_v3 = vld [vmem:[#allocation11] sm:$0xff]  }
 0x236   : > { %v1266_v45 = vmul.bf16 %v1250_v59, %v1084_v5  ;;  %v1269_v58 = vmul.bf16 %v1253_v42, %v1090_v48  ;;  %v1255_v53 = vmul.bf16 %v1239_v15, %v2910_v57  ;;  %v1981_v5 = vld [vmem:[#allocation11 + $0x38] sm:$0xff]  }
 0x237   : > { %v2052_v18 = vpop.eup %2051  ;;  %v1270_v30 = vmul.bf16 %v1254_v23, %v1092_v54  ;;  %v1256_v44 = vmul.bf16 %v1240_v11, %v2914_v40 }
 0x238   : > { %v1219_v0 = vmul.bf16 1056980736, %v2052_v18  ;;  %v1309_v14 = vunpack.c.l.bf16 %v1266_v45  ;;  %v1310_v51 = vunpack.c.h.bf16 %v1266_v45  ;;  %v1321_v20 = vunpack.c.l.bf16 %v1269_v58  ;;  %v1982_v18 = vld [vmem:[#allocation11 + $0x30] sm:$0xff]   ;;  %v1985_v45 = vld [vmem:[#allocation11 + $0x18] sm:$0xff]  }
 0x239   : > { %v1322_v47 = vunpack.c.h.bf16 %v1269_v58  ;;  %v1271_v57 = vmul.bf16 %v1255_v53, %v1094_v8  ;;  %v1325_v46 = vunpack.c.l.bf16 %v1270_v30  ;;  %v1326_v35 = vunpack.c.h.bf16 %v1270_v30  ;;  %v1792_v58 = vld [vmem:[%s3005_s6] ss:$0 sm:$0xff] }
 0x23a   : > { %v1235_v50 = vadd.bf16 1056980736, %v1219_v0  ;;  %v1312_v13 = vadd.f32 %v1310_v51, %v1308_v36  ;;  %v1272_v10 = vmul.bf16 %v1256_v44, %v1096_v34  ;;  %v1986_v0 = vld [vmem:[#allocation11 + $0x10] sm:$0xff]  }
 0x23b   : > { %v1329_v41 = vunpack.c.l.bf16 %v1271_v57  ;;  %v1330_v4 = vunpack.c.h.bf16 %v1271_v57 }
 0x23c   : > { %v1251_v21 = vmul.bf16 %v1235_v50, %v1171_v52  ;;  %v1311_v52 = vadd.f32 %v1309_v14, %v1307_v32  ;;  %v1333_v26 = vunpack.c.l.bf16 %v1272_v10  ;;  %v1334_v40 = vunpack.c.h.bf16 %v1272_v10 }
 0x23e   : > { %v1267_v39 = vmul.bf16 %v1251_v21, %v1086_v9 }
 0x240   : > { %v1313_v22 = vunpack.c.l.bf16 %v1267_v39  ;;  %v1314_v55 = vunpack.c.h.bf16 %v1267_v39 }
 0x242   : > { %v1315_v19 = vadd.f32 %v1313_v22, %v1311_v52  ;;  %v1316_v60 = vadd.f32 %v1314_v55, %v1312_v13 }
 0x244   : > { %v1319_v62 = vadd.f32 %v1317_v63, %v1315_v19  ;;  %v1320_v29 = vadd.f32 %v1318_v16, %v1316_v60 }
 0x246   : > { %v1323_v49 = vadd.f32 %v1321_v20, %v1319_v62  ;;  %v1324_v28 = vadd.f32 %v1322_v47, %v1320_v29 }
 0x248   : > { %v1327_v6 = vadd.f32 %v1325_v46, %v1323_v49  ;;  %v1328_v25 = vadd.f32 %v1326_v35, %v1324_v28 }
 0x24a   : > { %v1331_v59 = vadd.f32 %v1329_v41, %v1327_v6  ;;  %v1332_v7 = vadd.f32 %v1330_v4, %v1328_v25 }
 0x24c   : > { %v1335_v33 = vadd.f32 %v1333_v26, %v1331_v59  ;;  %v1336_v1 = vadd.f32 %v1334_v40, %v1332_v7 }
 0x24e   : > { %v1348_v2 = vpack.c.bf16 %v1336_v1, %v1335_v33 }
 0x250   : > { %1841 = vmatmul.mubr.bf16.vlgmr.msra.gmra.mxu1 %v1348_v2 }
 0x251   : > { %1860 = vmatprep.mubr.msk.bf16.mxu1 %vm2294_vm9, %v2293_v12  ;;  %1845 = vmatpush3.bf16.msra.mxu1 %v1981_v5 }
 0x252   : > { %1846 = vmatprep.subr.bf16.mxu1 %v2293_v12 }
 0x255   : > { %1847 = vmatpush3.bf16.msra.mxu1 %v1982_v18 }
 0x256   : > { %1848 = vmatprep.subr.bf16.mxu1 %v2293_v12 }
 0x259   : > { %1849 = vmatpush3.bf16.msra.mxu1 %v1983_v31 }
 0x25a   : > { %1850 = vmatprep.subr.bf16.mxu1 %v2293_v12 }
 0x25d   : > { %1851 = vmatpush3.bf16.msra.mxu1 %v1984_v37 }
 0x25e   : > { %1852 = vmatprep.subr.bf16.mxu1 %v2293_v12 }
 0x261   : > { %1853 = vmatpush3.bf16.msra.mxu1 %v1985_v45 }
 0x262   : > { %1854 = vmatprep.subr.bf16.mxu1 %v2293_v12 }
 0x265   : > { %1855 = vmatpush3.bf16.msra.mxu1 %v1986_v0 }
 0x266   : > { %1856 = vmatprep.subr.bf16.mxu1 %v2293_v12 }
 0x269   : > { %1857 = vmatpush3.bf16.msra.mxu1 %v1987_v27 }
 0x26a   : > { %1858 = vmatprep.subr.bf16.mxu1 %v2293_v12 }
 0x26d   : > { %1859 = vmatpush3.bf16.msra.mxu1 %v1988_v3 }
 0x310   : > { %v1454_v38 = vpop.f32.mrf.mxu1 }
 0x311   : > { %v1455_v56 = vadd.f32 %v1783_v43, %v1454_v38 }
 0x312   : > { %v1842_v50 = vpop.f32.mrf.mxu1 }
 0x313   : > { %v1461_v24 = vmul.f32 0.5, %v1455_v56 }
 0x314   : > { %v1457_v42 = vpop.f32.mrf.mxu1 }
 0x315   : > { %2053 = vtanh.f32 %v1461_v24  ;;  %v1458_v15 = vadd.f32 %v1783_v43, %v1457_v42 }
 0x316   : > { %v1843_v14 = vpop.f32.mrf.mxu1 }
 0x317   : > { %v1462_v51 = vmul.f32 0.5, %v1458_v15 }
 0x319   : > { %2055 = vtanh.f32 %v1462_v51 }
 0x322   : > { %v2054_v9 = vpop.eup %2053 }
 0x323   : > { %v1465_v21 = vmul.f32 0.5, %v2054_v9 }
 0x325   : > { %v1467_v12 = vadd.f32 0.5, %v1465_v21 }
 0x326   : > { %v2056_v17 = vpop.eup %2055 }
 0x327   : > { %v1466_v48 = vmul.f32 0.5, %v2056_v17  ;;  %v1469_v32 = vmul.f32 %v1467_v12, %v1455_v56 }
 0x329   : > { %v1468_v23 = vadd.f32 0.5, %v1466_v48 }
 0x32b   : > { %v1470_v36 = vmul.f32 %v1468_v23, %v1458_v15 }
 0x32d   : > { %v1471_v39 = vpack.c.bf16 %v1470_v36, %v1469_v32 }
 0x32f   : > { %1861 = vmatmul.mubr.bf16.vlgmr.msra.gmra.mxu1 %v1471_v39 }
 0x3ef   : > { %v1577_v11 = vpop.f32.mrf.mxu1 }
 0x3f0   : > { %v1578_v52 = vadd.f32 %v1792_v58, %v1577_v11 }
 0x3f1   : > { %v1862_v54 = vpop.f32.mrf.mxu1 }
 0x3f3   : > { %v1580_v53 = vpop.f32.mrf.mxu1 }
 0x3f4   : > { %v1581_v13 = vadd.f32 %v1792_v58, %v1580_v53 }
 0x3f5   : > { %v1863_v22 = vpop.f32.mrf.mxu1 }
 0x3f6   : > { %v1584_v55 = vadd.f32 %v1581_v13, %v1578_v52 }
 0x3f8   : > { %v1585_v61 = vrot.slane %v1584_v55, 4 }
 0x3fa   : > { %v1586_v63 = vadd.f32 %v1585_v61, %v1584_v55 }
 0x3fc   : > { %v1587_v30 = vrot.slane %v1586_v63, 2 }
 0x3fe   : > { %v1588_v8 = vadd.f32 %v1587_v30, %v1586_v63 }
 0x400   : > { %v1589_v16 = vrot.slane %v1588_v8, 1 }
 0x402   : > { %v1590_v19 = vadd.f32 %v1589_v16, %v1588_v8 }
 0x404   : > { %1591 = vst [vmem:[%s411_s5] sm:$0x1] %v1590_v19 }
 0x405   : > { %2204 = shalt.err (!%p2201_p9)
}
 0x406   : > { %s2205_s23 = scalar_lea.hbm %s1604_s0, 16  ;;  %s2209_s16 = scalar_lea.hbm %s3006_s7, 32 }
 0x407   : > { %p2206_p3 = scmp.ne.s32.totalorder %s1604_s0, %s2205_s23  ;;  %p2210_p12 = scmp.lt.s32.totalorder %s1604_s0, %s3006_s7 }
 0x408   : > { %p2211_p5 = scmp.lt.s32.totalorder %s2209_s16, %s2205_s23 }
 0x409   : > { %p2207_p4 = pnand %p2206_p3, %p2438_p13 }
 0x40a   : > { %p2212_p7 = por %p2211_p5, %p2210_p12 }
 0x40b   : > { %p2208_p11 = pneg %p2207_p4 }
 0x40d   : > { %p2213_p10 = pnand %p2212_p7, %p2208_p11 }
 0x40f   : > { %2216 = shalt.err (!%p2213_p10)
}
 0x410   : > { %1882 = dma.vmem_to_hbm [thread:$0]  (%p2438_p13), %s1607_s21, 16, %s1604_s0, %s1593_s15  }
 0x411 PF: > { %s1618_s9 = sand.u32 1, %s2263_s24   ;;  %p3041_p0 = scmp.ne.s32.totalorder %s3022_s10, 0 }
 0x412   : > { %p3042_p1 = scmp.ge.s32.totalorder %s2283_s29, 2  ;;  %s1619_s22 = scalar_lea.sflag [#allocation5], %s1618_s9 }
 0x414   : > { %p1902_p2 = pnand %p3042_p1, %p3041_p0 }
 0x416   : > { %p1903_p6 = pneg %p1902_p2 }
 0x418   : > { %2258 = dma.done.wait (%p1903_p6), %s1619_s22, 16  }
 0x419   : > { %2260 = vsyncadd (%p1903_p6), %s1619_s22, 4294967280  ;;  %s27_s29 = sadd.s32 1, %s2283_s29   ;;  %s3043_s27 = sld [smem:[#allocation18_spill]] }
 0x41a   : > { %p24_p8 = scmp.ge.s32.totalorder %s27_s29, 4   ;;  %s3044_s28 = sld [smem:[#allocation19_spill]] }
 0x41b   : > { %s3045_s24 = smov %s2267_s25  ;;  %s3046_s25 = smov %s2271_s26 }
 0x41c   : > { %s3047_s26 = smov %s2450_s13  ;;  %26 = sbr.rel (!%p24_p8) target bundleno = 14 (0xe), region = 126 }
 0x421   :  { %1623 = vsyncpa [#allocation4], 1 }
 0x422   :  { %1625 = vsyncpa [#allocation4 + $0x1], 1 }
 0x423   :  { %1626 = vsyncpa [#allocation7], 1 }
 0x424   :  { %1628 = vsyncpa [#allocation7 + $0x1], 1 }
 0x425   :  { %1629 = vsyncpa [#allocation10], 1 }
 0x426   :  { %1630 = vsyncpa [#allocation5], 1 }
 0x427   :  { %1632 = vsyncpa [#allocation5 + $0x1], 1 }

</bundles_post_ra>
